<compile_context>
chip_gen: v6e
topology: v6e:2x2x1
jax: 0.10.0
libtpu: 0.0.40
codegen_flags: <defaults>
</compile_context>

<pallas_src>
import jax
import jax.numpy as jnp
from jax import lax
from jax.experimental import pallas as pl
from jax.experimental.pallas import tpu as pltpu

NEG_SLOPE = 0.01  # PyTorch nn.LeakyReLU default


def _leaky(x):
    return jnp.where(x > 0, x, NEG_SLOPE * x)


def _shift_rows(v, off):
    """u[p, :] = v[p + off, :], zero-filled outside [0, P).  `off` is static."""
    if off == 0:
        return v
    p, c = v.shape
    if abs(off) >= p:
        return jnp.zeros_like(v)
    pad = jnp.zeros((abs(off), c), v.dtype)
    if off > 0:
        return jnp.concatenate([v[off:, :], pad], axis=0)
    return jnp.concatenate([pad, v[:off, :]], axis=0)


def _upsample_bn_kernel(x_ref, wmask_ref, w_dw_ref, b_dw_ref, w_pw_ref,
                        b_pw_ref, a_w_ref, a_h_ref, out_ref, t3_ref):
    """grid = (batch, output-row tile).

    x_ref    : (1, C, P)       NCHW input, spatially flattened (P = Hi*Wi)
    wmask_ref: (P, 2)          W-boundary masks [w >= 1, w <= Wi-2] as f32 0/1
    w_dw_ref : (9, C)          depthwise 3x3 taps, k = kh*3 + kw
    b_dw_ref : (1, C)
    w_pw_ref : (C, Co)         pointwise 1x1 weights
    b_pw_ref : (1, Co)
    a_w_ref  : (Wo, Wi)        bilinear (align_corners=True) column matrix
    a_h_ref  : (TH, Hi)        row-tile slice of the row matrix
    out_ref  : (1, TH*Wo, Co)  lane-dense output tile (NHWC-flat)
    t3_ref   : (Hi, Wo, Co)    VMEM scratch: W-upsampled features, per batch
    """
    p = x_ref.shape[2]
    wo, wi = a_w_ref.shape
    hi = p // wi
    th = a_h_ref.shape[0]
    co = w_pw_ref.shape[1]

    # ---- phase 1 (first row tile of each batch): conv + W-upsample -> scratch
    @pl.when(pl.program_id(1) == 0)
    def _():
        # (C, P) -> (P, C): spatial on rows, channels on the 128-lane axis.
        x = x_ref[0].astype(jnp.float32).T
        m_left = wmask_ref[:, 0:1]    # valid when dw == -1
        m_right = wmask_ref[:, 1:2]   # valid when dw == +1

        # depthwise 3x3 (pad=1): zero-filled row shifts + boundary masks,
        # balanced tree add so the 9 taps do not serialize the VALU.
        terms = []
        for kh in range(3):
            for kw in range(3):
                dh, dw = kh - 1, kw - 1
                tap = _shift_rows(x, dh * wi + dw)
                if dw == -1:
                    tap = tap * m_left
                elif dw == 1:
                    tap = tap * m_right
                k = kh * 3 + kw
                terms.append(tap * w_dw_ref[k:k + 1, :])
        while len(terms) > 1:
            nxt = [terms[i] + terms[i + 1] for i in range(0, len(terms) - 1, 2)]
            if len(terms) % 2:
                nxt.append(terms[-1])
            terms = nxt
        acc = _leaky(terms[0] + b_dw_ref[...])                    # (P, C)

        # pointwise 1x1 conv == one big MXU matmul (lane-dense N = Co).
        y = jnp.dot(acc, w_pw_ref[...].astype(jnp.float32),
                    preferred_element_type=jnp.float32)
        y = _leaky(y + b_pw_ref[...])                             # (P, Co)

        # W-direction upsample: one (Wo,Wi)@(Wi,Co) MXU dot per input row.
        a_w = a_w_ref[...].astype(jnp.float32)
        for h in range(hi):
            t3_ref[h] = jnp.dot(a_w, y[h * wi:(h + 1) * wi, :],
                                preferred_element_type=jnp.float32)

    # ---- phase 2 (every row tile): H-direction upsample + lane-dense store
    a_h = a_h_ref[...].astype(jnp.float32)                        # (TH, Hi)
    r = jnp.einsum('th,hwc->twc', a_h, t3_ref[...],
                   preferred_element_type=jnp.float32)            # (TH, Wo, Co)
    out_ref[0] = r.reshape(th * wo, co).astype(out_ref.dtype)


def _interp_matrix(n_out, n_in, dtype=jnp.float32):
    """Row matrix A (n_out, n_in) s.t. A @ v == bilinear(align_corners=True)."""
    if n_in == 1:
        return jnp.ones((n_out, 1), dtype)
    if n_out == 1:
        return jnp.eye(1, n_in, dtype=dtype)
    scale = (n_in - 1) / (n_out - 1)
    src = jnp.arange(n_out, dtype=jnp.float32) * scale
    lo = jnp.clip(jnp.floor(src).astype(jnp.int32), 0, n_in - 2)
    frac = src - lo.astype(jnp.float32)
    a = ((1.0 - frac)[:, None] * jax.nn.one_hot(lo, n_in, dtype=jnp.float32)
         + frac[:, None] * jax.nn.one_hot(lo + 1, n_in, dtype=jnp.float32))
    return a.astype(dtype)


@jax.jit
def upsample_bn(x, concat_with, w_dw, b_dw, w_pw, b_pw):
    """x: (N, C, Hi, Wi); concat_with: (N, Cc, Ho, Wo); w_dw: (C, 3, 3);
    b_dw: (C,); w_pw: (C, Co); b_pw: (Co,).  Returns (N, Co+Cc, Ho, Wo)."""
    n, c, hi, wi = x.shape
    _, _, ho, wo = concat_with.shape
    co = w_pw.shape[1]
    p = hi * wi

    # Free reshapes only -- no HBM transpose / pad passes before the kernel.
    x_flat = x.reshape(n, c, p)
    w_dw9 = w_dw.reshape(c, 9).T                 # (9, C)
    b_dw2 = b_dw.reshape(1, c)
    b_pw2 = b_pw.reshape(1, co)
    a_h = _interp_matrix(ho, hi)                 # (Ho, Hi)
    a_w = _interp_matrix(wo, wi)                 # (Wo, Wi)

    col = jnp.arange(p, dtype=jnp.int32) % wi
    wmask = jnp.stack([(col >= 1).astype(jnp.float32),
                       (col <= wi - 2).astype(jnp.float32)], axis=1)  # (P, 2)

    # Output-row tile; TH*Wo keeps the out block (8,128)-aligned.
    th = 8 if ho % 8 == 0 else ho
    n_ht = ho // th

    up_flat = pl.pallas_call(
        _upsample_bn_kernel,
        out_shape=jax.ShapeDtypeStruct((n, ho * wo, co), x.dtype),
        grid_spec=pltpu.PrefetchScalarGridSpec(
            num_scalar_prefetch=0,
            grid=(n, n_ht),
            in_specs=[
                pl.BlockSpec((1, c, p), lambda b, t: (b, 0, 0)),
                pl.BlockSpec((p, 2), lambda b, t: (0, 0)),
                pl.BlockSpec((9, c), lambda b, t: (0, 0)),
                pl.BlockSpec((1, c), lambda b, t: (0, 0)),
                pl.BlockSpec((c, co), lambda b, t: (0, 0)),
                pl.BlockSpec((1, co), lambda b, t: (0, 0)),
                pl.BlockSpec((wo, wi), lambda b, t: (0, 0)),
                pl.BlockSpec((th, hi), lambda b, t: (t, 0)),
            ],
            out_specs=pl.BlockSpec((1, th * wo, co), lambda b, t: (b, t, 0)),
            scratch_shapes=[pltpu.VMEM((hi, wo, co), jnp.float32)],
        ),
        compiler_params=pltpu.CompilerParams(
            dimension_semantics=("parallel", "arbitrary"),
            vmem_limit_bytes=48 * 1024 * 1024),
    )(x_flat, wmask, w_dw9, b_dw2, w_pw, b_pw2, a_w, a_h)

    # NHWC-flat -> NCHW; the transpose fuses with the (required) channel concat.
    up = up_flat.reshape(n, ho, wo, co).transpose(0, 3, 1, 2)
    return jnp.concatenate([up, concat_with], axis=1)


def _reference(x, concat_with, w_dw, b_dw, w_pw, b_pw):
    """Pure-JAX reference (XLA convs) matching PyTorch semantics."""
    n, c, hi, wi = x.shape
    _, _, ho, wo = concat_with.shape
    w_dw_oihw = w_dw[:, None, :, :]                               # (C,1,3,3)
    dw = lax.conv_general_dilated(
        x, w_dw_oihw, (1, 1), ((1, 1), (1, 1)),
        feature_group_count=c,
        dimension_numbers=('NCHW', 'OIHW', 'NCHW'))
    dw = _leaky(dw + b_dw[None, :, None, None])
    w_pw_oihw = jnp.transpose(w_pw, (1, 0))[:, :, None, None]      # (Co,C,1,1)
    pw = lax.conv_general_dilated(
        dw, w_pw_oihw, (1, 1), ((0, 0), (0, 0)),
        dimension_numbers=('NCHW', 'OIHW', 'NCHW'))
    pw = _leaky(pw + b_pw[None, :, None, None])
    a_h = _interp_matrix(ho, hi)
    a_w = _interp_matrix(wo, wi)
    up = jnp.einsum('oh,nchw->ncow', a_h, pw)
    up = jnp.einsum('pw,ncow->ncop', a_w, up)
    return jnp.concatenate([up, concat_with], axis=1)


if __name__ == "__main__":
    key = jax.random.PRNGKey(0)
    k_x, k_cat, k_wdw, k_bdw, k_wpw, k_bpw = jax.random.split(key, 6)

    # Small decoder-like shapes: skip_input=32, output_features=128.
    N, C_IN, HI, WI = 2, 32, 8, 8
    C_OUT = 128
    C_CAT, HO, WO = 16, 16, 16

    x = jax.random.normal(k_x, (N, C_IN, HI, WI), jnp.float32)
    concat_with = jax.random.normal(k_cat, (N, C_CAT, HO, WO), jnp.float32)

    # Deterministic synthetic parameters (shapes implied by SeperableConv2d).
    w_dw = jax.random.normal(k_wdw, (C_IN, 3, 3), jnp.float32) * 0.2
    b_dw = jax.random.normal(k_bdw, (C_IN,), jnp.float32) * 0.1
    w_pw = jax.random.normal(k_wpw, (C_IN, C_OUT), jnp.float32) * 0.1
    b_pw = jax.random.normal(k_bpw, (C_OUT,), jnp.float32) * 0.1

    out = jax.block_until_ready(
        upsample_bn(x, concat_with, w_dw, b_dw, w_pw, b_pw))
    ref = jax.block_until_ready(
        _reference(x, concat_with, w_dw, b_dw, w_pw, b_pw))

    assert out.shape == (N, C_OUT + C_CAT, HO, WO), out.shape
    max_err = float(jnp.max(jnp.abs(out - ref)))
    assert jnp.allclose(out, ref, atol=1e-3, rtol=1e-3), max_err
    print("KERNEL_OK")
</pallas_src>

<mosaic_0001>
module attributes {stable_mosaic.version = 11 : i64} {
  func.func @_upsample_bn_kernel(%arg0: i32, %arg1: i32, %arg2: memref<1x32x64xf32, #tpu.memory_space<vmem>>, %arg3: memref<64x2xf32, #tpu.memory_space<vmem>>, %arg4: memref<9x32xf32, #tpu.memory_space<vmem>>, %arg5: memref<1x32xf32, #tpu.memory_space<vmem>>, %arg6: memref<32x128xf32, #tpu.memory_space<vmem>>, %arg7: memref<1x128xf32, #tpu.memory_space<vmem>>, %arg8: memref<16x8xf32, #tpu.memory_space<vmem>>, %arg9: memref<8x8xf32, #tpu.memory_space<vmem>>, %arg10: memref<1x128x128xf32, #tpu.memory_space<vmem>>, %arg11: memref<8x16x128xf32, #tpu.memory_space<vmem>>) attributes {dimension_semantics = [#tpu.dimension_semantics<parallel>, #tpu.dimension_semantics<arbitrary>], iteration_bounds = array<i64: 2, 2>, scalar_prefetch = 0 : i64, scratch_operands = 1 : i64, tpu.core_type = #tpu.core_type<tc>, window_params = [{transform_indices = @transform_0, window_bounds = array<i64: 1, 32, 64>}, {pipeline_mode = #tpu.pipeline_mode<synchronous>, transform_indices = @transform_1, window_bounds = array<i64: 64, 2>}, {pipeline_mode = #tpu.pipeline_mode<synchronous>, transform_indices = @transform_2, window_bounds = array<i64: 9, 32>}, {pipeline_mode = #tpu.pipeline_mode<synchronous>, transform_indices = @transform_3, window_bounds = array<i64: 1, 32>}, {pipeline_mode = #tpu.pipeline_mode<synchronous>, transform_indices = @transform_4, window_bounds = array<i64: 32, 128>}, {pipeline_mode = #tpu.pipeline_mode<synchronous>, transform_indices = @transform_5, window_bounds = array<i64: 1, 128>}, {pipeline_mode = #tpu.pipeline_mode<synchronous>, transform_indices = @transform_6, window_bounds = array<i64: 16, 8>}, {transform_indices = @transform_7, window_bounds = array<i64: 8, 8>}, {transform_indices = @transform_8, window_bounds = array<i64: 1, 128, 128>}]} {
    %c0_i32 = arith.constant 0 : i32
    %0 = arith.cmpi eq, %arg1, %c0_i32 : i32
    %1 = arith.extui %0 : i1 to i32
    %c0_i32_0 = arith.constant 0 : i32
    %2 = arith.cmpi ne, %1, %c0_i32_0 : i32
    scf.if %2 {
      %c0_8 = arith.constant 0 : index
      %c0_9 = arith.constant 0 : index
      %c0_10 = arith.constant 0 : index
      %10 = vector.load %arg2[%c0_8, %c0_9, %c0_10] : memref<1x32x64xf32, #tpu.memory_space<vmem>>, vector<1x32x64xf32>
      %11 = vector.shape_cast %10 : vector<1x32x64xf32> to vector<32x64xf32>
      %12 = tpu.transpose %11, [1, 0] : vector<32x64xf32> -> vector<64x32xf32>
      %c0_11 = arith.constant 0 : index
      %c0_12 = arith.constant 0 : index
      %13 = vector.load %arg3[%c0_11, %c0_12] : memref<64x2xf32, #tpu.memory_space<vmem>>, vector<64x1xf32>
      %c0_13 = arith.constant 0 : index
      %c1 = arith.constant 1 : index
      %14 = vector.load %arg3[%c0_13, %c1] : memref<64x2xf32, #tpu.memory_space<vmem>>, vector<64x1xf32>
      %cst_14 = arith.constant 0.000000e+00 : f32
      %15 = vector.broadcast %cst_14 : f32 to vector<9x32xf32>
      %16 = vector.extract_strided_slice %12 {offsets = [0, 0], sizes = [55, 32], strides = [1, 1]} : vector<64x32xf32> to vector<55x32xf32>
      %17 = tpu.concatenate %15, %16 in 0 : vector<9x32xf32>, vector<55x32xf32> -> vector<64x32xf32>
      %18 = vector.broadcast %13 : vector<64x1xf32> to vector<64x32xf32>
      %19 = arith.mulf %17, %18 : vector<64x32xf32>
      %c0_15 = arith.constant 0 : index
      %c0_16 = arith.constant 0 : index
      %20 = vector.load %arg4[%c0_15, %c0_16] : memref<9x32xf32, #tpu.memory_space<vmem>>, vector<1x32xf32>
      %21 = vector.broadcast %20 : vector<1x32xf32> to vector<64x32xf32>
      %22 = arith.mulf %19, %21 : vector<64x32xf32>
      %cst_17 = arith.constant 0.000000e+00 : f32
      %23 = vector.broadcast %cst_17 : f32 to vector<8x32xf32>
      %24 = vector.extract_strided_slice %12 {offsets = [0, 0], sizes = [56, 32], strides = [1, 1]} : vector<64x32xf32> to vector<56x32xf32>
      %25 = tpu.concatenate %23, %24 in 0 : vector<8x32xf32>, vector<56x32xf32> -> vector<64x32xf32>
      %c1_18 = arith.constant 1 : index
      %c0_19 = arith.constant 0 : index
      %26 = vector.load %arg4[%c1_18, %c0_19] : memref<9x32xf32, #tpu.memory_space<vmem>>, vector<1x32xf32>
      %27 = vector.broadcast %26 : vector<1x32xf32> to vector<64x32xf32>
      %28 = arith.mulf %25, %27 : vector<64x32xf32>
      %cst_20 = arith.constant 0.000000e+00 : f32
      %29 = vector.broadcast %cst_20 : f32 to vector<7x32xf32>
      %30 = vector.extract_strided_slice %12 {offsets = [0, 0], sizes = [57, 32], strides = [1, 1]} : vector<64x32xf32> to vector<57x32xf32>
      %31 = tpu.concatenate %29, %30 in 0 : vector<7x32xf32>, vector<57x32xf32> -> vector<64x32xf32>
      %32 = vector.broadcast %14 : vector<64x1xf32> to vector<64x32xf32>
      %33 = arith.mulf %31, %32 : vector<64x32xf32>
      %c2 = arith.constant 2 : index
      %c0_21 = arith.constant 0 : index
      %34 = vector.load %arg4[%c2, %c0_21] : memref<9x32xf32, #tpu.memory_space<vmem>>, vector<1x32xf32>
      %35 = vector.broadcast %34 : vector<1x32xf32> to vector<64x32xf32>
      %36 = arith.mulf %33, %35 : vector<64x32xf32>
      %cst_22 = arith.constant 0.000000e+00 : f32
      %37 = vector.broadcast %cst_22 : f32 to vector<1x32xf32>
      %38 = vector.extract_strided_slice %12 {offsets = [0, 0], sizes = [63, 32], strides = [1, 1]} : vector<64x32xf32> to vector<63x32xf32>
      %39 = tpu.concatenate %37, %38 in 0 : vector<1x32xf32>, vector<63x32xf32> -> vector<64x32xf32>
      %40 = vector.broadcast %13 : vector<64x1xf32> to vector<64x32xf32>
      %41 = arith.mulf %39, %40 : vector<64x32xf32>
      %c3 = arith.constant 3 : index
      %c0_23 = arith.constant 0 : index
      %42 = vector.load %arg4[%c3, %c0_23] : memref<9x32xf32, #tpu.memory_space<vmem>>, vector<1x32xf32>
      %43 = vector.broadcast %42 : vector<1x32xf32> to vector<64x32xf32>
      %44 = arith.mulf %41, %43 : vector<64x32xf32>
      %c4 = arith.constant 4 : index
      %c0_24 = arith.constant 0 : index
      %45 = vector.load %arg4[%c4, %c0_24] : memref<9x32xf32, #tpu.memory_space<vmem>>, vector<1x32xf32>
      %46 = vector.broadcast %45 : vector<1x32xf32> to vector<64x32xf32>
      %47 = arith.mulf %12, %46 : vector<64x32xf32>
      %cst_25 = arith.constant 0.000000e+00 : f32
      %48 = vector.broadcast %cst_25 : f32 to vector<1x32xf32>
      %49 = vector.extract_strided_slice %12 {offsets = [1, 0], sizes = [63, 32], strides = [1, 1]} : vector<64x32xf32> to vector<63x32xf32>
      %50 = tpu.concatenate %49, %48 in 0 : vector<63x32xf32>, vector<1x32xf32> -> vector<64x32xf32>
      %51 = vector.broadcast %14 : vector<64x1xf32> to vector<64x32xf32>
      %52 = arith.mulf %50, %51 : vector<64x32xf32>
      %c5 = arith.constant 5 : index
      %c0_26 = arith.constant 0 : index
      %53 = vector.load %arg4[%c5, %c0_26] : memref<9x32xf32, #tpu.memory_space<vmem>>, vector<1x32xf32>
      %54 = vector.broadcast %53 : vector<1x32xf32> to vector<64x32xf32>
      %55 = arith.mulf %52, %54 : vector<64x32xf32>
      %cst_27 = arith.constant 0.000000e+00 : f32
      %56 = vector.broadcast %cst_27 : f32 to vector<7x32xf32>
      %57 = vector.extract_strided_slice %12 {offsets = [7, 0], sizes = [57, 32], strides = [1, 1]} : vector<64x32xf32> to vector<57x32xf32>
      %58 = tpu.concatenate %57, %56 in 0 : vector<57x32xf32>, vector<7x32xf32> -> vector<64x32xf32>
      %59 = vector.broadcast %13 : vector<64x1xf32> to vector<64x32xf32>
      %60 = arith.mulf %58, %59 : vector<64x32xf32>
      %c6 = arith.constant 6 : index
      %c0_28 = arith.constant 0 : index
      %61 = vector.load %arg4[%c6, %c0_28] : memref<9x32xf32, #tpu.memory_space<vmem>>, vector<1x32xf32>
      %62 = vector.broadcast %61 : vector<1x32xf32> to vector<64x32xf32>
      %63 = arith.mulf %60, %62 : vector<64x32xf32>
      %cst_29 = arith.constant 0.000000e+00 : f32
      %64 = vector.broadcast %cst_29 : f32 to vector<8x32xf32>
      %65 = vector.extract_strided_slice %12 {offsets = [8, 0], sizes = [56, 32], strides = [1, 1]} : vector<64x32xf32> to vector<56x32xf32>
      %66 = tpu.concatenate %65, %64 in 0 : vector<56x32xf32>, vector<8x32xf32> -> vector<64x32xf32>
      %c7 = arith.constant 7 : index
      %c0_30 = arith.constant 0 : index
      %67 = vector.load %arg4[%c7, %c0_30] : memref<9x32xf32, #tpu.memory_space<vmem>>, vector<1x32xf32>
      %68 = vector.broadcast %67 : vector<1x32xf32> to vector<64x32xf32>
      %69 = arith.mulf %66, %68 : vector<64x32xf32>
      %cst_31 = arith.constant 0.000000e+00 : f32
      %70 = vector.broadcast %cst_31 : f32 to vector<9x32xf32>
      %71 = vector.extract_strided_slice %12 {offsets = [9, 0], sizes = [55, 32], strides = [1, 1]} : vector<64x32xf32> to vector<55x32xf32>
      %72 = tpu.concatenate %71, %70 in 0 : vector<55x32xf32>, vector<9x32xf32> -> vector<64x32xf32>
      %73 = vector.broadcast %14 : vector<64x1xf32> to vector<64x32xf32>
      %74 = arith.mulf %72, %73 : vector<64x32xf32>
      %c8 = arith.constant 8 : index
      %c0_32 = arith.constant 0 : index
      %75 = vector.load %arg4[%c8, %c0_32] : memref<9x32xf32, #tpu.memory_space<vmem>>, vector<1x32xf32>
      %76 = vector.broadcast %75 : vector<1x32xf32> to vector<64x32xf32>
      %77 = arith.mulf %74, %76 : vector<64x32xf32>
      %78 = arith.addf %22, %28 : vector<64x32xf32>
      %79 = arith.addf %36, %44 : vector<64x32xf32>
      %80 = arith.addf %47, %55 : vector<64x32xf32>
      %81 = arith.addf %63, %69 : vector<64x32xf32>
      %82 = arith.addf %78, %79 : vector<64x32xf32>
      %83 = arith.addf %80, %81 : vector<64x32xf32>
      %84 = arith.addf %82, %83 : vector<64x32xf32>
      %85 = arith.addf %84, %77 : vector<64x32xf32>
      %c0_33 = arith.constant 0 : index
      %c0_34 = arith.constant 0 : index
      %86 = vector.load %arg5[%c0_33, %c0_34] : memref<1x32xf32, #tpu.memory_space<vmem>>, vector<1x32xf32>
      %87 = vector.broadcast %86 : vector<1x32xf32> to vector<64x32xf32>
      %88 = arith.addf %85, %87 : vector<64x32xf32>
      %cst_35 = arith.constant 0.000000e+00 : f32
      %89 = vector.broadcast %cst_35 : f32 to vector<64x32xf32>
      %90 = arith.cmpf ogt, %88, %89 : vector<64x32xf32>
      %cst_36 = arith.constant 0.00999999977 : f32
      %91 = vector.broadcast %cst_36 : f32 to vector<64x32xf32>
      %92 = arith.mulf %91, %88 : vector<64x32xf32>
      %93 = arith.select %90, %88, %92 : vector<64x32xi1>, vector<64x32xf32>
      %c0_37 = arith.constant 0 : index
      %c0_38 = arith.constant 0 : index
      %94 = vector.load %arg6[%c0_37, %c0_38] : memref<32x128xf32, #tpu.memory_space<vmem>>, vector<32x128xf32>
      %cst_39 = arith.constant dense<0.000000e+00> : vector<64x128xf32>
      %95 = tpu.matmul %93, %94, %cst_39 {dimension_numbers = #tpu.dot_dimension_numbers<[1], [0], [0], [1], [0, 0, 1, 1], [], []>} : vector<64x32xf32>, vector<32x128xf32>, vector<64x128xf32> -> vector<64x128xf32>
      %c0_40 = arith.constant 0 : index
      %c0_41 = arith.constant 0 : index
      %96 = vector.load %arg7[%c0_40, %c0_41] : memref<1x128xf32, #tpu.memory_space<vmem>>, vector<1x128xf32>
      %97 = vector.broadcast %96 : vector<1x128xf32> to vector<64x128xf32>
      %98 = arith.addf %95, %97 : vector<64x128xf32>
      %cst_42 = arith.constant 0.000000e+00 : f32
      %99 = vector.broadcast %cst_42 : f32 to vector<64x128xf32>
      %100 = arith.cmpf ogt, %98, %99 : vector<64x128xf32>
      %cst_43 = arith.constant 0.00999999977 : f32
      %101 = vector.broadcast %cst_43 : f32 to vector<64x128xf32>
      %102 = arith.mulf %101, %98 : vector<64x128xf32>
      %103 = arith.select %100, %98, %102 : vector<64x128xi1>, vector<64x128xf32>
      %c0_44 = arith.constant 0 : index
      %c0_45 = arith.constant 0 : index
      %104 = vector.load %arg8[%c0_44, %c0_45] : memref<16x8xf32, #tpu.memory_space<vmem>>, vector<16x8xf32>
      %105 = vector.extract_strided_slice %103 {offsets = [0, 0], sizes = [8, 128], strides = [1, 1]} : vector<64x128xf32> to vector<8x128xf32>
      %cst_46 = arith.constant dense<0.000000e+00> : vector<16x128xf32>
      %106 = tpu.matmul %104, %105, %cst_46 {dimension_numbers = #tpu.dot_dimension_numbers<[1], [0], [0], [1], [0, 0, 1, 1], [], []>} : vector<16x8xf32>, vector<8x128xf32>, vector<16x128xf32> -> vector<16x128xf32>
      %c0_47 = arith.constant 0 : index
      %c0_48 = arith.constant 0 : index
      %c0_49 = arith.constant 0 : index
      %107 = vector.load %arg11[%c0_47, %c0_48, %c0_49] : memref<8x16x128xf32, #tpu.memory_space<vmem>>, vector<1x16x128xf32>
      %108 = vector.shape_cast %107 : vector<1x16x128xf32> to vector<16x128xf32>
      %109 = vector.shape_cast %106 : vector<16x128xf32> to vector<1x16x128xf32>
      tpu.vector_store %arg11[%c0_47, %c0_48, %c0_49], %109 {strides = array<i32>} : memref<8x16x128xf32, #tpu.memory_space<vmem>>, vector<1x16x128xf32>,
      %110 = vector.extract_strided_slice %103 {offsets = [8, 0], sizes = [8, 128], strides = [1, 1]} : vector<64x128xf32> to vector<8x128xf32>
      %cst_50 = arith.constant dense<0.000000e+00> : vector<16x128xf32>
      %111 = tpu.matmul %104, %110, %cst_50 {dimension_numbers = #tpu.dot_dimension_numbers<[1], [0], [0], [1], [0, 0, 1, 1], [], []>} : vector<16x8xf32>, vector<8x128xf32>, vector<16x128xf32> -> vector<16x128xf32>
      %c1_51 = arith.constant 1 : index
      %c0_52 = arith.constant 0 : index
      %c0_53 = arith.constant 0 : index
      %112 = vector.load %arg11[%c1_51, %c0_52, %c0_53] : memref<8x16x128xf32, #tpu.memory_space<vmem>>, vector<1x16x128xf32>
      %113 = vector.shape_cast %112 : vector<1x16x128xf32> to vector<16x128xf32>
      %114 = vector.shape_cast %111 : vector<16x128xf32> to vector<1x16x128xf32>
      tpu.vector_store %arg11[%c1_51, %c0_52, %c0_53], %114 {strides = array<i32>} : memref<8x16x128xf32, #tpu.memory_space<vmem>>, vector<1x16x128xf32>,
      %115 = vector.extract_strided_slice %103 {offsets = [16, 0], sizes = [8, 128], strides = [1, 1]} : vector<64x128xf32> to vector<8x128xf32>
      %cst_54 = arith.constant dense<0.000000e+00> : vector<16x128xf32>
      %116 = tpu.matmul %104, %115, %cst_54 {dimension_numbers = #tpu.dot_dimension_numbers<[1], [0], [0], [1], [0, 0, 1, 1], [], []>} : vector<16x8xf32>, vector<8x128xf32>, vector<16x128xf32> -> vector<16x128xf32>
      %c2_55 = arith.constant 2 : index
      %c0_56 = arith.constant 0 : index
      %c0_57 = arith.constant 0 : index
      %117 = vector.load %arg11[%c2_55, %c0_56, %c0_57] : memref<8x16x128xf32, #tpu.memory_space<vmem>>, vector<1x16x128xf32>
      %118 = vector.shape_cast %117 : vector<1x16x128xf32> to vector<16x128xf32>
      %119 = vector.shape_cast %116 : vector<16x128xf32> to vector<1x16x128xf32>
      tpu.vector_store %arg11[%c2_55, %c0_56, %c0_57], %119 {strides = array<i32>} : memref<8x16x128xf32, #tpu.memory_space<vmem>>, vector<1x16x128xf32>,
      %120 = vector.extract_strided_slice %103 {offsets = [24, 0], sizes = [8, 128], strides = [1, 1]} : vector<64x128xf32> to vector<8x128xf32>
      %cst_58 = arith.constant dense<0.000000e+00> : vector<16x128xf32>
      %121 = tpu.matmul %104, %120, %cst_58 {dimension_numbers = #tpu.dot_dimension_numbers<[1], [0], [0], [1], [0, 0, 1, 1], [], []>} : vector<16x8xf32>, vector<8x128xf32>, vector<16x128xf32> -> vector<16x128xf32>
      %c3_59 = arith.constant 3 : index
      %c0_60 = arith.constant 0 : index
      %c0_61 = arith.constant 0 : index
      %122 = vector.load %arg11[%c3_59, %c0_60, %c0_61] : memref<8x16x128xf32, #tpu.memory_space<vmem>>, vector<1x16x128xf32>
      %123 = vector.shape_cast %122 : vector<1x16x128xf32> to vector<16x128xf32>
      %124 = vector.shape_cast %121 : vector<16x128xf32> to vector<1x16x128xf32>
      tpu.vector_store %arg11[%c3_59, %c0_60, %c0_61], %124 {strides = array<i32>} : memref<8x16x128xf32, #tpu.memory_space<vmem>>, vector<1x16x128xf32>,
      %125 = vector.extract_strided_slice %103 {offsets = [32, 0], sizes = [8, 128], strides = [1, 1]} : vector<64x128xf32> to vector<8x128xf32>
      %cst_62 = arith.constant dense<0.000000e+00> : vector<16x128xf32>
      %126 = tpu.matmul %104, %125, %cst_62 {dimension_numbers = #tpu.dot_dimension_numbers<[1], [0], [0], [1], [0, 0, 1, 1], [], []>} : vector<16x8xf32>, vector<8x128xf32>, vector<16x128xf32> -> vector<16x128xf32>
      %c4_63 = arith.constant 4 : index
      %c0_64 = arith.constant 0 : index
      %c0_65 = arith.constant 0 : index
      %127 = vector.load %arg11[%c4_63, %c0_64, %c0_65] : memref<8x16x128xf32, #tpu.memory_space<vmem>>, vector<1x16x128xf32>
      %128 = vector.shape_cast %127 : vector<1x16x128xf32> to vector<16x128xf32>
      %129 = vector.shape_cast %126 : vector<16x128xf32> to vector<1x16x128xf32>
      tpu.vector_store %arg11[%c4_63, %c0_64, %c0_65], %129 {strides = array<i32>} : memref<8x16x128xf32, #tpu.memory_space<vmem>>, vector<1x16x128xf32>,
      %130 = vector.extract_strided_slice %103 {offsets = [40, 0], sizes = [8, 128], strides = [1, 1]} : vector<64x128xf32> to vector<8x128xf32>
      %cst_66 = arith.constant dense<0.000000e+00> : vector<16x128xf32>
      %131 = tpu.matmul %104, %130, %cst_66 {dimension_numbers = #tpu.dot_dimension_numbers<[1], [0], [0], [1], [0, 0, 1, 1], [], []>} : vector<16x8xf32>, vector<8x128xf32>, vector<16x128xf32> -> vector<16x128xf32>
      %c5_67 = arith.constant 5 : index
      %c0_68 = arith.constant 0 : index
      %c0_69 = arith.constant 0 : index
      %132 = vector.load %arg11[%c5_67, %c0_68, %c0_69] : memref<8x16x128xf32, #tpu.memory_space<vmem>>, vector<1x16x128xf32>
      %133 = vector.shape_cast %132 : vector<1x16x128xf32> to vector<16x128xf32>
      %134 = vector.shape_cast %131 : vector<16x128xf32> to vector<1x16x128xf32>
      tpu.vector_store %arg11[%c5_67, %c0_68, %c0_69], %134 {strides = array<i32>} : memref<8x16x128xf32, #tpu.memory_space<vmem>>, vector<1x16x128xf32>,
      %135 = vector.extract_strided_slice %103 {offsets = [48, 0], sizes = [8, 128], strides = [1, 1]} : vector<64x128xf32> to vector<8x128xf32>
      %cst_70 = arith.constant dense<0.000000e+00> : vector<16x128xf32>
      %136 = tpu.matmul %104, %135, %cst_70 {dimension_numbers = #tpu.dot_dimension_numbers<[1], [0], [0], [1], [0, 0, 1, 1], [], []>} : vector<16x8xf32>, vector<8x128xf32>, vector<16x128xf32> -> vector<16x128xf32>
      %c6_71 = arith.constant 6 : index
      %c0_72 = arith.constant 0 : index
      %c0_73 = arith.constant 0 : index
      %137 = vector.load %arg11[%c6_71, %c0_72, %c0_73] : memref<8x16x128xf32, #tpu.memory_space<vmem>>, vector<1x16x128xf32>
      %138 = vector.shape_cast %137 : vector<1x16x128xf32> to vector<16x128xf32>
      %139 = vector.shape_cast %136 : vector<16x128xf32> to vector<1x16x128xf32>
      tpu.vector_store %arg11[%c6_71, %c0_72, %c0_73], %139 {strides = array<i32>} : memref<8x16x128xf32, #tpu.memory_space<vmem>>, vector<1x16x128xf32>,
      %140 = vector.extract_strided_slice %103 {offsets = [56, 0], sizes = [8, 128], strides = [1, 1]} : vector<64x128xf32> to vector<8x128xf32>
      %cst_74 = arith.constant dense<0.000000e+00> : vector<16x128xf32>
      %141 = tpu.matmul %104, %140, %cst_74 {dimension_numbers = #tpu.dot_dimension_numbers<[1], [0], [0], [1], [0, 0, 1, 1], [], []>} : vector<16x8xf32>, vector<8x128xf32>, vector<16x128xf32> -> vector<16x128xf32>
      %c7_75 = arith.constant 7 : index
      %c0_76 = arith.constant 0 : index
      %c0_77 = arith.constant 0 : index
      %142 = vector.load %arg11[%c7_75, %c0_76, %c0_77] : memref<8x16x128xf32, #tpu.memory_space<vmem>>, vector<1x16x128xf32>
      %143 = vector.shape_cast %142 : vector<1x16x128xf32> to vector<16x128xf32>
      %144 = vector.shape_cast %141 : vector<16x128xf32> to vector<1x16x128xf32>
      tpu.vector_store %arg11[%c7_75, %c0_76, %c0_77], %144 {strides = array<i32>} : memref<8x16x128xf32, #tpu.memory_space<vmem>>, vector<1x16x128xf32>,
    } else {
    }
    %c0 = arith.constant 0 : index
    %c0_1 = arith.constant 0 : index
    %3 = vector.load %arg9[%c0, %c0_1] : memref<8x8xf32, #tpu.memory_space<vmem>>, vector<8x8xf32>
    %c0_2 = arith.constant 0 : index
    %c0_3 = arith.constant 0 : index
    %c0_4 = arith.constant 0 : index
    %4 = vector.load %arg11[%c0_2, %c0_3, %c0_4] : memref<8x16x128xf32, #tpu.memory_space<vmem>>, vector<8x16x128xf32>
    "tpu.trace_start"() <{level = 10 : i32, message = "th,hwc->twc"}> : () -> ()
    %cst = arith.constant dense<0.000000e+00> : vector<8x16x128xf32>
    %5 = tpu.matmul %3, %4, %cst {dimension_numbers = #tpu.dot_dimension_numbers<[1], [0], [0], [1, 2], [0, 0, 1, 1, 1, 2], [], []>} : vector<8x8xf32>, vector<8x16x128xf32>, vector<8x16x128xf32> -> vector<8x16x128xf32>
    "tpu.trace_stop"() : () -> ()
    %6 = vector.shape_cast %5 : vector<8x16x128xf32> to vector<128x128xf32>
    %c0_5 = arith.constant 0 : index
    %c0_6 = arith.constant 0 : index
    %c0_7 = arith.constant 0 : index
    %7 = vector.load %arg10[%c0_5, %c0_6, %c0_7] : memref<1x128x128xf32, #tpu.memory_space<vmem>>, vector<1x128x128xf32>
    %8 = vector.shape_cast %7 : vector<1x128x128xf32> to vector<128x128xf32>
    %9 = vector.shape_cast %6 : vector<128x128xf32> to vector<1x128x128xf32>
    tpu.vector_store %arg10[%c0_5, %c0_6, %c0_7], %9 {strides = array<i32>} : memref<1x128x128xf32, #tpu.memory_space<vmem>>, vector<1x128x128xf32>,
    return
  }
  func.func @transform_0(%arg0: i32, %arg1: i32) -> (i32, i32, i32) {
    %c0_i32 = arith.constant 0 : i32
    %c0_i32_0 = arith.constant 0 : i32
    %c0_i32_1 = arith.constant 0 : i32
    return %arg0, %c0_i32, %c0_i32_0 : i32, i32, i32
  }
  func.func @transform_1(%arg0: i32, %arg1: i32) -> (i32, i32) {
    %c0_i32 = arith.constant 0 : i32
    %c0_i32_0 = arith.constant 0 : i32
    %c0_i32_1 = arith.constant 0 : i32
    return %c0_i32, %c0_i32_0 : i32, i32
  }
  func.func @transform_2(%arg0: i32, %arg1: i32) -> (i32, i32) {
    %c0_i32 = arith.constant 0 : i32
    %c0_i32_0 = arith.constant 0 : i32
    %c0_i32_1 = arith.constant 0 : i32
    return %c0_i32, %c0_i32_0 : i32, i32
  }
  func.func @transform_3(%arg0: i32, %arg1: i32) -> (i32, i32) {
    %c0_i32 = arith.constant 0 : i32
    %c0_i32_0 = arith.constant 0 : i32
    %c0_i32_1 = arith.constant 0 : i32
    return %c0_i32, %c0_i32_0 : i32, i32
  }
  func.func @transform_4(%arg0: i32, %arg1: i32) -> (i32, i32) {
    %c0_i32 = arith.constant 0 : i32
    %c0_i32_0 = arith.constant 0 : i32
    %c0_i32_1 = arith.constant 0 : i32
    return %c0_i32, %c0_i32_0 : i32, i32
  }
  func.func @transform_5(%arg0: i32, %arg1: i32) -> (i32, i32) {
    %c0_i32 = arith.constant 0 : i32
    %c0_i32_0 = arith.constant 0 : i32
    %c0_i32_1 = arith.constant 0 : i32
    return %c0_i32, %c0_i32_0 : i32, i32
  }
  func.func @transform_6(%arg0: i32, %arg1: i32) -> (i32, i32) {
    %c0_i32 = arith.constant 0 : i32
    %c0_i32_0 = arith.constant 0 : i32
    %c0_i32_1 = arith.constant 0 : i32
    return %c0_i32, %c0_i32_0 : i32, i32
  }
  func.func @transform_7(%arg0: i32, %arg1: i32) -> (i32, i32) {
    %c0_i32 = arith.constant 0 : i32
    %c0_i32_0 = arith.constant 0 : i32
    return %arg1, %c0_i32 : i32, i32
  }
  func.func @transform_8(%arg0: i32, %arg1: i32) -> (i32, i32, i32) {
    %c0_i32 = arith.constant 0 : i32
    %c0_i32_0 = arith.constant 0 : i32
    return %arg0, %arg1, %c0_i32 : i32, i32, i32
  }
}

</mosaic_0001>

<bundles_post_ra>
// kernel: upsample_bn.1
= control target key start
LH: loop header
LB: loop body
LE: loop exit
PB: predicated region body
PF: predicated region fallthrough
CT: control target
= control target key end

     0   :  { %s3208_s27 = smov 0   ;;  %s3210_s28 = smov 0   ;;  %s3820_s0 = inlined_call_operand.vmem [shape: f32[2,32,64], index: 0, kind: input, shape index: {}]   ;;  %s3821_s1 = inlined_call_operand.vmem [shape: f32[64,2], index: 1, kind: input, shape index: {}]   ;;  %s3822_s2 = inlined_call_operand.vmem [shape: f32[9,32], index: 2, kind: input, shape index: {}]   ;;  %s3823_s3 = inlined_call_operand.vmem [shape: f32[1,32], index: 3, kind: input, shape index: {}]   ;;  %s3824_s4 = inlined_call_operand.vmem [shape: f32[32,128], index: 4, kind: input, shape index: {}]   ;;  %s3825_s5 = inlined_call_operand.vmem [shape: f32[1,128], index: 5, kind: input, shape index: {}]   ;;  %s3826_s6 = inlined_call_operand.vmem [shape: f32[16,8], index: 6, kind: input, shape index: {}, may-alias: {6,7}]   ;;  %s3827_s7 = inlined_call_operand.vmem [shape: f32[16,8], index: 7, kind: input, shape index: {}, may-alias: {6,7}]   ;;  %s3828_s8 = inlined_call_operand.vmem [shape: f32[2,256,128], index: 8, kind: output, shape index: {}]  }
   0x1   :  { %s3212_s29 = smov 0   ;;  %s3214_s30 = smov 0  }
   0x2   :  { %s3216_s9 = smov 0  }
   0x3 LB: > { %s27_s10 = sadd.s32 1, %s3148_s29  ;;  %s30_s11 = sadd.s32 1, %s3152_s30  ;;  %s3156_s9 = sphi %s3216_s9, %s18_s9   ;;  %s3152_s30 = sphi %s3214_s30, %s3850_s30   ;;  %s3148_s29 = sphi %s3212_s29, %s3849_s29   ;;  %s3144_s28 = sphi %s3210_s28, %s3848_s28   ;;  %s3140_s27 = sphi %s3208_s27, %s3847_s27  }
   0x4   : > { %p28_p0 = scmp.ge.s32.totalorder %s27_s10, 2  ;;  %p2898_p1 = scmp.ge.s32.totalorder %s3156_s9, 1 }
   0x5   : > { %p285_p2 = scmp.lt.s32.totalorder %s3156_s9, 5 }
   0x6   : > { %s3852_s10 = smov (%p28_p0, %s27_s10), 0  ;;  %s3854_s11 = smov (!%p28_p0, %s30_s11), %s3152_s30 }
   0x7   : > { %p286_p3 = pnand %p2898_p1, %p285_p2  ;;  %p32_p4 = scmp.ge.s32.totalorder %s3854_s11, 2 }
   0x8   : > { %p327_p5 = scmp.lt.s32.totalorder (!%p286_p3), %s3144_s28, 1  ;;  %p332_p6 = scmp.lt.s32.totalorder (!%p286_p3), %s3140_s27, 1 }
   0x9   : > { %s3856_s11 = smov (%p32_p4, %s3854_s11), 0  ;;  %289 = sbr.rel (%p286_p3) target bundleno = 936 (0x3a8), region = 52 }
   0xa   : > { %s2902_s12 = sshll.u32 (!%p286_p3), %s3140_s27, 4  ;;  %p2905_p8 = scmp.ne.s32.totalorder (!%p286_p3), %s3140_s27, 0 }
   0xb   : > { %p339_p7 = scmp.lt.s32.totalorder (!%p286_p3), %s2902_s12, 31 }
   0xe   : > { %s3858_s28 = smov (!%p327_p5, %s3144_s28), 1  ;;  %s3860_s12 = smov (!%p339_p7, %s2902_s12), 31 }
   0xf   : > { %s333_s13 = scalar_select %p332_p6, %s3140_s27, 1 }
  0x10   : > { %s2951_s14 = sshll.u32 %s3858_s28, 5  ;;  %349 = sbr.rel (%p2905_p8) target bundleno = 692 (0x2b4), region = 56 }
  0x11   : > { %s3246_s17 = scalar_lea.vmem %s3820_s0, %s2951_s14  ;;  %s2901_s18 = sshll.u32 %s333_s13, 3 }
  0x12   : > { %s3251_s21 = scalar_lea.vmem %s3827_s7, %s2901_s18  ;;  %s342_s22 = sadd.s32 %s2951_s14, %s3860_s12 }
  0x13   : > { %s2904_s23 = sshll.u32 %s342_s22, 3 }
  0x14   : > { %s3256_s26 = scalar_lea.vmem %s3828_s8, %s2904_s23 }
  0x15   : > { %v387_v0 = vld [vmem:[%s3821_s1 + $0x8] sm:$0xff]  ;;  %v3158_v1 = vmov 0   ;;  %v3159_v2 = vmov 1   ;;  %v386_v3 = vld [vmem:[%s3821_s1] sm:$0xff]  ;;  %v392_v4 = vld [vmem:[%s3821_s1 + $0x30] sm:$0xff]  ;;  %vm401_vm0 = vcmask 1040384  }
  0x16   : > { %3096 = vset.pattern.permute.xlu1 %v3158_v1  ;;  %3094 = vset.pattern.permute.xlu0 %v3159_v2  ;;  %v388_v5 = vld [vmem:[%s3821_s1 + $0x10] sm:$0xff]  ;;  %v393_v6 = vld [vmem:[%s3821_s1 + $0x38] sm:$0xff]  ;;  %v390_v8 = vld [vmem:[%s3821_s1 + $0x20] sm:$0xff]  ;;  %vm498_vm1 = vcmask 1046528   ;;  %vm807_vm2 = vcmask 261120   ;;  %vm963_vm11 = vcmask 64512  }
  0x17   : > { %430 = vperm.xlu1 %3096, %v387_v0   ;;  %524 = vperm.xlu0 %3094, %v386_v3   ;;  %v389_v7 = vld [vmem:[%s3821_s1 + $0x18] sm:$0xff]  ;;  %v391_v9 = vld [vmem:[%s3821_s1 + $0x28] sm:$0xff]  ;;  %v350_v10 = vld [vmem:[%s3246_s17] sm:$0xff] }
  0x18   : > { %v351_v11 = vld [vmem:[%s3246_s17 + $0x8] sm:$0xff]  ;;  %v352_v12 = vld [vmem:[%s3246_s17 + $0x10] sm:$0xff]  ;;  %v353_v13 = vld [vmem:[%s3246_s17 + $0x18] sm:$0xff] }
  0x19   : > { %v799_v14 = vld [vmem:[%s3824_s4 + $0x18] sm:$0xff]  ;;  %v798_v15 = vld [vmem:[%s3824_s4 + $0x10] sm:$0xff]  ;;  %v797_v16 = vld [vmem:[%s3824_s4 + $0x8] sm:$0xff] }
  0x1a   : > { %2988 = vmatprep.subr.mxu0 %v799_v14  ;;  %v796_v17 = vld [vmem:[%s3824_s4] sm:$0xff] }
  0x1b   : > { %3097 = vset.pattern.permute.xlu1 %v3159_v2  ;;  %3095 = vset.pattern.permute.xlu0 %v3158_v1  ;;  %v3330_v34 = vld [vmem:[%s3822_s2] ss:$0 sm:$0xff]  ;;  %v3335_v35 = vld [vmem:[%s3822_s2 + $0x1] ss:$0 sm:$0xff]  ;;  %v3342_v41 = vld [vmem:[%s3822_s2 + $0x2] ss:$0 sm:$0xff] }
  0x1c   : > { %528 = vperm.xlu1 %3097, %v387_v0   ;;  %425 = vperm.xlu0 %3095, %v386_v3   ;;  %v489_v37 = vmul.f32 0.0, %v3335_v35  ;;  %v3347_v42 = vld [vmem:[%s3822_s2 + $0x3] ss:$0 sm:$0xff]  ;;  %v3356_v46 = vld [vmem:[%s3822_s2 + $0x4] ss:$0 sm:$0xff] }
  0x1d   : > { %2989 = vmatpush3.msra.mxu0 %v799_v14  ;;  %v3363_v50 = vld [vmem:[%s3822_s2 + $0x7] ss:$0 sm:$0xff]  ;;  %v3385_v0 = vld [vmem:[%s3822_s2 + $0x6] ss:$0 sm:$0xff] }
  0x1e   : > { %2990 = vmatprep.subr.mxu0 %v798_v15  ;;  %v3368_v55 = vmul.f32 0.0, %v3363_v50 }
  0x1f   : > { %2991 = vmatpush3.msra.mxu0 %v798_v15 }
  0x20   : > { %3098 = vset.pattern.permute.xlu1 %v3158_v1  ;;  %455 = vperm.xlu0 %3095, %v392_v4  }
  0x21   : > { %435 = vperm.xlu1 %3098, %v388_v5   ;;  %2992 = vmatprep.subr.mxu0 %v797_v16 }
  0x22   : > { %2993 = vmatpush3.msra.mxu0 %v797_v16 }
  0x23   : > { %2994 = vmatprep.subr.mxu0 %v796_v17 }
  0x24   : > { %460 = vperm.xlu0 %3095, %v393_v6   ;;  %2995 = vmatpush3.msra.mxu0 %v796_v17 }
  0x25   : > { %440 = vperm.xlu1 %3098, %v389_v7  }
  0x28   : > { %3099 = vset.pattern.permute.xlu0 %v3159_v2 }
  0x29   : > { %445 = vperm.xlu1 %3098, %v390_v8   ;;  %532 = vperm.xlu0 %3099, %v388_v5  }
  0x2d   : > { %450 = vperm.xlu1 %3098, %v391_v9   ;;  %536 = vperm.xlu0 %3099, %v389_v7  }
  0x31   : > { %540 = vperm.xlu0 %3099, %v390_v8  }
  0x35   : > { %544 = vperm.xlu0 %3099, %v391_v9  }
  0x39   : > { %548 = vperm.xlu0 %3099, %v392_v4  }
  0x3d   : > { %552 = vperm.xlu0 %3099, %v393_v6  }
  0x56   : > { %354 = vxpose.xlu1.b32.start [1/4] (short) (narrow) %v350_v10, 64 }
  0x5a   : > { %355 = vxpose.xlu1.b32.cont [2/4] (short) (narrow) %v351_v11, 64 }
  0x5e   : > { %356 = vxpose.xlu1.b32.cont [3/4] (short) (narrow) %v352_v12, 64 }
  0x62   : > { %357 = vxpose.xlu1.b32.end [4/4] (short) (narrow) %v353_v13, 64 }
  0x92   : > { %v3299_v18 = vpop.permute.xlu0 %524  ;;  %v3303_v21 = vpop.permute.xlu1 %430 }
  0x97   : > { %v426_v19 = vpop.permute.xlu0 %425  ;;  %v3307_v23 = vpop.permute.xlu1 %528 }
  0x98   : > { %v463_v32 = vmul.f32 0.0, %v426_v19 }
  0x9a   : > { %v476_v38 = vmul.f32 %v3330_v34, %v463_v32 }
  0x9b   : > { %v3301_v20 = vpop.permute.xlu0 %455 }
  0x9c   : > { %v3311_v25 = vpop.permute.xlu1 %435  ;;  %v3365_v52 = vadd.f32 %v489_v37, %v476_v38 }
  0x9f   : > { %v3305_v22 = vpop.permute.xlu0 %460 }
  0xa0   : > { %v3315_v27 = vpop.permute.xlu1 %440 }
  0xa4   : > { %v3309_v24 = vpop.permute.xlu0 %532  ;;  %v3319_v29 = vpop.permute.xlu1 %445 }
  0xa8   : > { %v3313_v26 = vpop.permute.xlu0 %536  ;;  %v3323_v31 = vpop.permute.xlu1 %450 }
  0xac   : > { %v3317_v28 = vpop.permute.xlu0 %540 }
  0xb0   : > { %v3321_v30 = vpop.permute.xlu0 %544 }
  0xb4   : > { %v3325_v33 = vpop.permute.xlu0 %548 }
  0xb8   : > { %v3351_v45 = vpop.permute.xlu0 %552 }
  0xb9   : > { %v3374_v59 = vmul.f32 0.0, %v3351_v45 }
  0xbb   : > { %3829 = vst [vmem:[#allocation3_spill] sm:$0xff] %v3374_v59 }
  0xd2   : > { %v370_v36 = vpop.trf.xlu1 }
  0xd3   : > { %v402_v39 = vrot.slane %v370_v36, 7  ;;  %v499_v40 = vrot.slane %v370_v36, 1  ;;  %v490_v60 = vmul.f32 %v3335_v35, %v370_v36  ;;  %v3378_v61 = vmul.f32 %v3356_v46, %v370_v36 }
  0xd5   : > { %v422_v43 = vsel %vm401_vm0, 0.0, %v402_v39  ;;  %v522_v44 = vsel %vm498_vm1, 0.0, %v499_v40 }
  0xd6   : > { %v464_v47 = vmul.f32 %v3303_v21, %v422_v43  ;;  %v555_v48 = vmul.f32 %v3299_v18, %v522_v44  ;;  %v579_v49 = vmul.f32 %v426_v19, %v422_v43  ;;  %v371_v51 = vpop.trf.xlu1 }
  0xd7   : > { %v403_v53 = vrot.slane %v371_v51, 7  ;;  %v500_v54 = vrot.slane %v371_v51, 1  ;;  %v491_v2 = vmul.f32 %v3335_v35, %v371_v51  ;;  %v606_v4 = vmul.f32 %v3356_v46, %v371_v51 }
  0xd8   : > { %v477_v56 = vmul.f32 %v3330_v34, %v464_v47  ;;  %v568_v57 = vmul.f32 %v3342_v41, %v555_v48  ;;  %v592_v58 = vmul.f32 %v3347_v42, %v579_v49  ;;  %v664_v8 = vmul.f32 %v3363_v50, %v371_v51  ;;  %v3427_v49 = vld [vmem:[%s3822_s2 + $0x5] ss:$0 sm:$0xff] }
  0xd9   : > { %v404_v62 = vsel %vm401_vm0, %v402_v39, %v403_v53  ;;  %v501_v63 = vsel %vm498_vm1, %v499_v40, %v500_v54 }
  0xda   : > { %v465_v1 = vmul.f32 %v3311_v25, %v404_v62  ;;  %v556_v3 = vmul.f32 %v3307_v23, %v501_v63  ;;  %v372_v5 = vpop.trf.xlu1  ;;  %v580_v6 = vmul.f32 %v3303_v21, %v404_v62  ;;  %v638_v7 = vmul.f32 %v426_v19, %v404_v62 }
  0xdb   : > { %v405_v9 = vrot.slane %v372_v5, 7  ;;  %v3393_v10 = vadd.f32 %v490_v60, %v477_v56  ;;  %v3395_v11 = vadd.f32 %v592_v58, %v568_v57  ;;  %v502_v13 = vrot.slane %v372_v5, 1 }
  0xdc   : > { %v478_v12 = vmul.f32 %v3330_v34, %v465_v1  ;;  %v3399_v14 = vmul.f32 %v3342_v41, %v556_v3  ;;  %v3402_v15 = vmul.f32 %v3299_v18, %v501_v63  ;;  %v651_v16 = vmul.f32 %v3385_v0, %v638_v7 }
  0xdd   : > { %v406_v17 = vsel %vm401_vm0, %v403_v53, %v405_v9  ;;  %v492_v32 = vmul.f32 %v3335_v35, %v372_v5  ;;  %v3409_v36 = vsel %vm498_vm1, %v500_v54, %v502_v13  ;;  %v3413_v39 = vmul.f32 %v3347_v42, %v580_v6 }
  0xde   : > { %v466_v19 = vmul.f32 %v3315_v27, %v406_v17  ;;  %v581_v37 = vmul.f32 %v3311_v25, %v406_v17  ;;  %v373_v38 = vpop.trf.xlu1  ;;  %v557_v40 = vmul.f32 %v3309_v24, %v3409_v36  ;;  %v616_v43 = vmul.f32 %v3307_v23, %v3409_v36 }
  0xdf   : > { %v639_v44 = vmul.f32 %v3303_v21, %v406_v17  ;;  %v3420_v47 = vadd.f32 %v491_v2, %v478_v12  ;;  %v3422_v48 = vadd.f32 %v664_v8, %v651_v16  ;;  %v607_v51 = vmul.f32 %v3356_v46, %v372_v5 }
  0xe0   : > { %v407_v53 = vrot.slane %v373_v38, 7  ;;  %v479_v54 = vmul.f32 %v3330_v34, %v466_v19  ;;  %v629_v56 = vmul.f32 %v3427_v49, %v616_v43  ;;  %v665_v21 = vmul.f32 %v3363_v50, %v372_v5 }
  0xe1   : > { %v652_v57 = vmul.f32 %v3385_v0, %v639_v44  ;;  %v3435_v58 = vmul.f32 %v3342_v41, %v557_v40  ;;  %v3438_v60 = vmul.f32 %v3347_v42, %v581_v37  ;;  %v504_v63 = vrot.slane %v373_v38, 1 }
  0xe2   : > { %v408_v62 = vsel %vm401_vm0, %v405_v9, %v407_v53  ;;  %v374_v1 = vpop.trf.xlu1  ;;  %v710_v2 = vadd.f32 %v629_v56, %v606_v4  ;;  %v493_v8 = vmul.f32 %v3335_v35, %v373_v38  ;;  %v3448_v17 = vadd.f32 %v492_v32, %v479_v54 }
  0xe3   : > { %v718_v3 = vadd.f32 %v665_v21, %v652_v57  ;;  %v467_v6 = vmul.f32 %v3319_v29, %v408_v62  ;;  %v582_v7 = vmul.f32 %v3315_v27, %v408_v62  ;;  %v3445_v5 = vsel %vm498_vm1, %v502_v13, %v504_v63 }
  0xe4   : > { %v640_v12 = vmul.f32 %v3311_v25, %v408_v62  ;;  %v409_v16 = vrot.slane %v374_v1, 7  ;;  %3830 = vst [vmem:[#allocation4_spill] sm:$0xff] %v3448_v17  ;;  %v558_v9 = vmul.f32 %v3313_v26, %v3445_v5  ;;  %v608_v4 = vmul.f32 %v3356_v46, %v373_v38 }
  0xe5   : > { %v666_v19 = vmul.f32 %v3363_v50, %v373_v38  ;;  %v480_v37 = vmul.f32 %v3330_v34, %v467_v6  ;;  %v617_v40 = vmul.f32 %v3309_v24, %v3445_v5  ;;  %v3459_v44 = vadd.f32 %v718_v3, %v710_v2 }
  0xe6   : > { %v653_v13 = vmul.f32 %v3385_v0, %v640_v12  ;;  %v410_v43 = vsel %vm401_vm0, %v407_v53, %v409_v16  ;;  %v375_v25 = vpop.trf.xlu1  ;;  %v3462_v32 = vmul.f32 %v3347_v42, %v582_v7  ;;  %v506_v56 = vrot.slane %v374_v1, 1 }
  0xe7   : > { %3831 = vst [vmem:[#allocation5_spill] sm:$0xff] %v3459_v44  ;;  %v468_v54 = vmul.f32 %v3323_v31, %v410_v43  ;;  %v3466_v38 = vmul.f32 %v3342_v41, %v558_v9  ;;  %v630_v57 = vmul.f32 %v3427_v49, %v617_v40  ;;  %v494_v21 = vmul.f32 %v3335_v35, %v374_v1 }
  0xe8   : > { %v583_v62 = vmul.f32 %v3319_v29, %v410_v43  ;;  %v719_v6 = vadd.f32 %v666_v19, %v653_v13  ;;  %v3473_v2 = vsel %vm498_vm1, %v504_v63, %v506_v56  ;;  %v641_v3 = vmul.f32 %v3315_v27, %v410_v43 }
  0xe9   : > { %v481_v53 = vmul.f32 %v3330_v34, %v468_v54  ;;  %v3476_v7 = vadd.f32 %v493_v8, %v480_v37  ;;  %v711_v12 = vadd.f32 %v630_v57, %v607_v51  ;;  %v609_v9 = vmul.f32 %v3356_v46, %v374_v1 }
  0xea   : > { %v618_v40 = vmul.f32 %v3313_v26, %v3473_v2  ;;  %v559_v59 = vmul.f32 %v3317_v28, %v3473_v2  ;;  %v654_v19 = vmul.f32 %v3385_v0, %v641_v3  ;;  %v667_v13 = vmul.f32 %v3363_v50, %v374_v1  ;;  %v376_v37 = vpop.trf.xlu1 }
  0xeb   : > { %3832 = vst [vmem:[#allocation6_spill] sm:$0xff] %v3476_v7  ;;  %v411_v54 = vrot.slane %v375_v25, 7  ;;  %v3486_v63 = vmul.f32 %v3347_v42, %v583_v62  ;;  %v3489_v8 = vadd.f32 %v494_v21, %v481_v53  ;;  %v508_v51 = vrot.slane %v375_v25, 1 }
  0xec   : > { %v631_v27 = vmul.f32 %v3427_v49, %v618_v40  ;;  %v3491_v43 = vadd.f32 %v719_v6, %v711_v12  ;;  %v720_v57 = vadd.f32 %v667_v13, %v654_v19  ;;  %v495_v17 = vmul.f32 %v3335_v35, %v375_v25 }
  0xed   : > { %3833 = vst [vmem:[#allocation7_spill] sm:$0xff] %v3486_v63  ;;  %3834 = vst [vmem:[#allocation8_spill] sm:$0xff] %v3489_v8  ;;  %v412_v7 = vsel %vm401_vm0, %v409_v16, %v411_v54  ;;  %v3497_v44 = vsel %vm498_vm1, %v506_v56, %v508_v51  ;;  %v3501_v21 = vmul.f32 %v3342_v41, %v559_v59  ;;  %v413_v12 = vrot.slane %v376_v37, 7 }
  0xee   : > { %3835 = vst [vmem:[#allocation9_spill] sm:$0xff] %v3491_v43  ;;  %v712_v3 = vadd.f32 %v631_v27, %v608_v4  ;;  %v469_v1 = vmul.f32 %v3301_v20, %v412_v7  ;;  %v584_v62 = vmul.f32 %v3323_v31, %v412_v7  ;;  %v619_v6 = vmul.f32 %v3317_v28, %v3497_v44 }
  0xef   : > { %v642_v53 = vmul.f32 %v3319_v29, %v412_v7  ;;  %v560_v4 = vmul.f32 %v3321_v30, %v3497_v44  ;;  %v610_v40 = vmul.f32 %v3356_v46, %v375_v25  ;;  %v668_v56 = vmul.f32 %v3363_v50, %v375_v25 }
  0xf0   : > { %v482_v16 = vmul.f32 %v3330_v34, %v469_v1  ;;  %v3511_v19 = vadd.f32 %v720_v57, %v712_v3  ;;  %v632_v59 = vmul.f32 %v3427_v49, %v619_v6  ;;  %v414_v27 = vsel %vm401_vm0, %v411_v54, %v413_v12 }
  0xf1   : > { %v655_v13 = vmul.f32 %v3385_v0, %v642_v53  ;;  %v3517_v29 = vmul.f32 %v3347_v42, %v584_v62  ;;  %v470_v7 = vmul.f32 %v3305_v22, %v414_v27  ;;  %v496_v1 = vmul.f32 %v3335_v35, %v376_v37 }
  0xf2   : > { %3836 = vst [vmem:[#allocation10_spill] sm:$0xff] %v3511_v19  ;;  %v510_v8 = vrot.slane %v376_v37, 1  ;;  %v713_v43 = vadd.f32 %v632_v59, %v609_v9  ;;  %v585_v25 = vmul.f32 %v3301_v20, %v414_v27  ;;  %v643_v57 = vmul.f32 %v3323_v31, %v414_v27 }
  0xf3   : > { %3837 = vst [vmem:[#allocation11_spill] sm:$0xff] %v3517_v29  ;;  %v721_v63 = vadd.f32 %v668_v56, %v655_v13  ;;  %v3524_v3 = vmul.f32 %v3342_v41, %v560_v4  ;;  %v699_v6 = vadd.f32 %v495_v17, %v482_v16  ;;  %v628_v62 = vmul.f32 %v3427_v49, %v3402_v15  ;;  %v377_v56 = vpop.trf.xlu1  ;;  %v3540_v17 = vld [vmem:[%s3822_s2 + $0x8] ss:$0 sm:$0xff] }
  0xf4   : > { %v3527_v54 = vsel %vm498_vm1, %v508_v51, %v510_v8  ;;  %v483_v53 = vmul.f32 %v3330_v34, %v470_v7  ;;  %v656_v31 = vmul.f32 %v3385_v0, %v643_v57  ;;  %v611_v51 = vmul.f32 %v3356_v46, %v376_v37 }
  0xf5   : > { %v561_v35 = vmul.f32 %v3325_v33, %v3527_v54  ;;  %v620_v9 = vmul.f32 %v3321_v30, %v3527_v54  ;;  %v669_v15 = vmul.f32 %v3363_v50, %v376_v37  ;;  %v672_v34 = vmul.f32 %v3299_v18, %v3409_v36 }
  0xf6   : > { %v709_v16 = vadd.f32 %v628_v62, %v3378_v61  ;;  %v3547_v4 = vadd.f32 %v721_v63, %v713_v43  ;;  %v598_v27 = vmul.f32 %v3347_v42, %v585_v25  ;;  %v725_v7 = vadd.f32 %v3395_v11, %v3365_v52  ;;  %v3562_v52 = vld [vmem:[%s3823_s3] ss:$0 sm:$0xff] }
  0xf7   : > { %v633_v59 = vmul.f32 %v3427_v49, %v620_v9  ;;  %v574_v13 = vmul.f32 %v3342_v41, %v561_v35  ;;  %v512_v37 = vrot.slane %v377_v56, 1  ;;  %v576_v19 = vrot.slane %v377_v56, 7 }
  0xf8   : > { %v733_v57 = vadd.f32 %v3422_v48, %v709_v16  ;;  %v700_v29 = vadd.f32 %v496_v1, %v483_v53  ;;  %v722_v36 = vadd.f32 %v669_v15, %v656_v31  ;;  %v685_v61 = vmul.f32 %v3540_v17, %v672_v34 }
  0xf9   : > { %v714_v18 = vadd.f32 %v633_v59, %v610_v40  ;;  %v513_v43 = vsel %vm498_vm1, %v510_v8, %v512_v37  ;;  %v577_v62 = vsel %vm401_vm0, %v413_v12, %v576_v19  ;;  %v614_v25 = vsel %vm498_vm1, %v512_v37, 0.0 }
  0xfa   : > { %v741_v63 = vadd.f32 %v733_v57, %v725_v7  ;;  %v707_v11 = vadd.f32 %v598_v27, %v574_v13  ;;  %v562_v48 = vmul.f32 %v3351_v45, %v513_v43  ;;  %v586_v40 = vmul.f32 %v577_v62, %v3305_v22 }
  0xfb   : > { %v612_v1 = vmul.f32 %v3356_v46, %v377_v56  ;;  %v621_v35 = vmul.f32 %v3325_v33, %v513_v43  ;;  %v622_v8 = vmul.f32 %v614_v25, %v3351_v45  ;;  %v637_v12 = vsel %vm401_vm0, %v576_v19, 0.0 }
  0xfc   : > { %v749_v53 = vadd.f32 %v741_v63, %v685_v61  ;;  %v575_v9 = vmul.f32 %v3342_v41, %v562_v48  ;;  %v599_v31 = vmul.f32 %v3347_v42, %v586_v40  ;;  %v644_v15 = vmul.f32 %v577_v62, %v3301_v20  ;;  %v3842_v62 = vld [vmem:[#allocation11_spill] sm:$0xff]  ;;  %v3843_v48 = vld [vmem:[#allocation10_spill] sm:$0xff] }
  0xfd   : > { %v645_v34 = vmul.f32 %v637_v12, %v3305_v22  ;;  %v634_v59 = vmul.f32 %v3427_v49, %v621_v35  ;;  %v635_v46 = vmul.f32 %v3427_v49, %v622_v8  ;;  %v670_v13 = vmul.f32 %v3363_v50, %v377_v56  ;;  %v3845_v35 = vld [vmem:[#allocation3_spill] sm:$0xff] }
  0xfe   : > { %v764_v16 = vadd.f32 %v3562_v52, %v749_v53  ;;  %v738_v27 = vadd.f32 %v722_v36, %v714_v18  ;;  %v657_v45 = vmul.f32 %v3385_v0, %v644_v15  ;;  %v708_v41 = vadd.f32 %v599_v31, %v575_v9 }
  0xff   : > { %v658_v19 = vmul.f32 %v3385_v0, %v645_v34  ;;  %v715_v7 = vadd.f32 %v634_v59, %v611_v51  ;;  %v716_v20 = vadd.f32 %v635_v46, %v612_v1  ;;  %v731_v57 = vadd.f32 %v707_v11, %v699_v6  ;;  %v3844_v1 = vld [vmem:[#allocation6_spill] sm:$0xff] }
 0x100   : > { %vm772_vm3 = vcmp.gt.f32.partialorder %v764_v16, 0.0  ;;  %v780_v42 = vmul.f32 0.01, %v764_v16  ;;  %v678_v22 = vmul.f32 %v614_v25, %v3325_v33  ;;  %v723_v37 = vadd.f32 %v670_v13, %v657_v45 }
 0x101   : > { %v724_v61 = vadd.f32 %v3368_v55, %v658_v19  ;;  %v732_v49 = vadd.f32 %v708_v41, %v700_v29  ;;  %v673_v50 = vmul.f32 %v3307_v23, %v3445_v5  ;;  %v702_v56 = vadd.f32 %v3413_v39, %v3399_v14 }
 0x102   : > { %v788_v63 = vsel %vm772_vm3, %v764_v16, %v780_v42  ;;  %v739_v0 = vadd.f32 %v723_v37, %v715_v7  ;;  %v674_v6 = vmul.f32 %v3309_v24, %v3473_v2  ;;  %v703_v33 = vadd.f32 %v3438_v60, %v3435_v58  ;;  %v3838_v2 = vld [vmem:[#allocation5_spill] sm:$0xff]  ;;  %v3839_v58 = vld [vmem:[#allocation4_spill] sm:$0xff] }
 0x103   : > { %2996 = vmatprep.mubr.msk.f32.mxu0 %vm807_vm2, %v788_v63  ;;  %v740_v18 = vadd.f32 %v724_v61, %v716_v20  ;;  %v677_v55 = vmul.f32 %v3321_v30, %v513_v43  ;;  %v726_v29 = vadd.f32 %v702_v56, %v3393_v10  ;;  %v675_v23 = vmul.f32 %v3313_v26, %v3497_v44  ;;  %v3840_v10 = vld [vmem:[#allocation7_spill] sm:$0xff] }
 0x104   : > { %v704_v14 = vadd.f32 %v3462_v32, %v3466_v38  ;;  %v691_v39 = vmul.f32 %v3540_v17, %v678_v22  ;;  %v747_v5 = vadd.f32 %v739_v0, %v731_v57  ;;  %v686_v51 = vmul.f32 %v3540_v17, %v673_v50  ;;  %v3841_v38 = vld [vmem:[#allocation9_spill] sm:$0xff] }
 0x105   : > { %v727_v24 = vadd.f32 %v703_v33, %v3420_v47  ;;  %v742_v36 = vadd.f32 %v3838_v2, %v726_v29  ;;  %v676_v30 = vmul.f32 %v3317_v28, %v3527_v54  ;;  %v705_v26 = vadd.f32 %v3840_v10, %v3501_v21  ;;  %v3846_v21 = vld [vmem:[#allocation8_spill] sm:$0xff]  ;;  %v2916_v33 = vld [vmem:[%s3825_s5] ss:$0 sm:$0xff] }
 0x106   : > { %v728_v60 = vadd.f32 %v704_v14, %v3839_v58  ;;  %v748_v44 = vadd.f32 %v740_v18, %v732_v49  ;;  %v687_v32 = vmul.f32 %v3540_v17, %v674_v6  ;;  %v706_v25 = vadd.f32 %v3842_v62, %v3524_v3 }
 0x107   : > { %v743_v43 = vadd.f32 %v3841_v38, %v727_v24  ;;  %v750_v11 = vadd.f32 %v742_v36, %v686_v51  ;;  %v688_v47 = vmul.f32 %v3540_v17, %v675_v23  ;;  %v729_v53 = vadd.f32 %v705_v26, %v3844_v1 }
 0x108   : > { %v744_v40 = vadd.f32 %v3843_v48, %v728_v60  ;;  %v692_v28 = vmul.f32 %v3540_v17, %v3845_v35  ;;  %v730_v8 = vadd.f32 %v706_v25, %v3846_v21  ;;  %v755_v12 = vadd.f32 %v747_v5, %v691_v39  ;;  %v962_v60 = vld [vmem:[%s3826_s6 + $0x8] sm:$0xff] }
 0x109   : > { %v751_v54 = vadd.f32 %v743_v43, %v687_v32  ;;  %v765_v9 = vadd.f32 %v3562_v52, %v750_v11  ;;  %v689_v15 = vmul.f32 %v3540_v17, %v676_v30  ;;  %v745_v3 = vadd.f32 %v3547_v4, %v729_v53 }
 0x10a   : > { %v752_v31 = vadd.f32 %v744_v40, %v688_v47  ;;  %v690_v16 = vmul.f32 %v3540_v17, %v677_v55  ;;  %v746_v59 = vadd.f32 %v738_v27, %v730_v8  ;;  %v756_v46 = vadd.f32 %v748_v44, %v692_v28 }
 0x10b   : > { %v766_v34 = vadd.f32 %v3562_v52, %v751_v54  ;;  %vm773_vm4 = vcmp.gt.f32.partialorder %v765_v9, 0.0  ;;  %v781_v13 = vmul.f32 0.01, %v765_v9  ;;  %v753_v19 = vadd.f32 %v745_v3, %v689_v15 }
 0x10c   : > { %v767_v45 = vadd.f32 %v3562_v52, %v752_v31  ;;  %v754_v42 = vadd.f32 %v746_v59, %v690_v16  ;;  %v770_v7 = vadd.f32 %v3562_v52, %v755_v12  ;;  %v771_v61 = vadd.f32 %v3562_v52, %v756_v46 }
 0x10d   : > { %vm774_vm5 = vcmp.gt.f32.partialorder %v766_v34, 0.0  ;;  %v782_v41 = vmul.f32 0.01, %v766_v34  ;;  %v789_v20 = vsel %vm773_vm4, %v765_v9, %v781_v13  ;;  %v768_v4 = vadd.f32 %v3562_v52, %v753_v19 }
 0x10e   : > { %vm775_vm6 = vcmp.gt.f32.partialorder %v767_v45, 0.0  ;;  %v783_v57 = vmul.f32 0.01, %v767_v45  ;;  %2997 = vmatmul.mubr.msk.f32.vlgmr.msra.gmra.mxu0 %vm807_vm2, %v789_v20  ;;  %v769_v27 = vadd.f32 %v3562_v52, %v754_v42  ;;  %v786_v49 = vmul.f32 0.01, %v770_v7  ;;  %v3636_v52 = vld [vmem:[%s3826_s6] sm:$0xff] }
 0x10f   : > { %v790_v17 = vsel %vm774_vm5, %v766_v34, %v782_v41  ;;  %vm776_vm7 = vcmp.gt.f32.partialorder %v768_v4, 0.0  ;;  %v784_v37 = vmul.f32 0.01, %v768_v4  ;;  %vm778_vm9 = vcmp.gt.f32.partialorder %v770_v7, 0.0  ;;  %3010 = vmatprep.mubr.msk.f32.mxu1 %vm963_vm11, %v3636_v52 }
 0x110   : > { %2999 = vmatprep.mubr.msk.f32.mxu0 %vm807_vm2, %v790_v17  ;;  %v791_v22 = vsel %vm775_vm6, %v767_v45, %v783_v57  ;;  %vm777_vm8 = vcmp.gt.f32.partialorder %v769_v27, 0.0  ;;  %v785_v63 = vmul.f32 0.01, %v769_v27  ;;  %v787_v0 = vmul.f32 0.01, %v771_v61 }
 0x111   : > { %v792_v50 = vsel %vm776_vm7, %v768_v4, %v784_v37  ;;  %v794_v18 = vsel %vm778_vm9, %v770_v7, %v786_v49  ;;  %vm779_vm10 = vcmp.gt.f32.partialorder %v771_v61, 0.0 }
 0x112   : > { %3000 = vmatmul.mubr.msk.f32.gmra.mxu0 %vm807_vm2, %v791_v22  ;;  %v793_v56 = vsel %vm777_vm8, %v769_v27, %v785_v63  ;;  %v795_v6 = vsel %vm779_vm10, %v771_v61, %v787_v0 }
 0x113   : > { %3002 = vmatprep.mubr.msk.f32.mxu0 %vm807_vm2, %v792_v50 }
 0x116   : > { %3003 = vmatmul.mubr.msk.f32.gmra.mxu0 %vm807_vm2, %v793_v56 }
 0x117   : > { %3005 = vmatprep.mubr.msk.f32.mxu0 %vm807_vm2, %v794_v18 }
 0x11a   : > { %3006 = vmatmul.mubr.msk.f32.gmra.mxu0 %vm807_vm2, %v795_v6 }
 0x11b   : > { %3040 = vmatprep.mubr.msk.f32.mxu0 %vm963_vm11, %v3636_v52 }
 0x1ce   : > { %v2998_v55 = vpop.f32.mrf.mxu0 }
 0x1cf   : > { %v904_v29 = vadd.f32 %v2998_v55, %v2916_v33 }
 0x1d0   : > { %v898_v23 = vpop.f32.mrf.mxu0 }
 0x1d1   : > { %v899_v14 = vadd.f32 %v2916_v33, %v898_v23  ;;  %v946_v5 = vmul.f32 0.01, %v904_v29  ;;  %vm938_vm13 = vcmp.gt.f32.partialorder %v904_v29, 0.0 }
 0x1d2   : > { %v3001_v39 = vpop.f32.mrf.mxu0 }
 0x1d3   : > { %vm937_vm12 = vcmp.gt.f32.partialorder %v899_v14, 0.0  ;;  %v945_v51 = vmul.f32 0.01, %v899_v14  ;;  %v914_v2 = vadd.f32 %v3001_v39, %v2916_v33  ;;  %v954_v26 = vsel %vm938_vm13, %v904_v29, %v946_v5 }
 0x1d4   : > { %v908_v24 = vpop.f32.mrf.mxu0 }
 0x1d5   : > { %v953_v36 = vsel %vm937_vm12, %v899_v14, %v945_v51  ;;  %v909_v58 = vadd.f32 %v2916_v33, %v908_v24  ;;  %v948_v32 = vmul.f32 0.01, %v914_v2  ;;  %vm940_vm15 = vcmp.gt.f32.partialorder %v914_v2, 0.0 }
 0x1d6   : > { %3008 = vmatprep.subr.mxu1 %v953_v36  ;;  %v3004_v30 = vpop.f32.mrf.mxu0 }
 0x1d7   : > { %3009 = vmatpush3.msra.mxu1 %v953_v36  ;;  %v947_v10 = vmul.f32 0.01, %v909_v58  ;;  %vm939_vm14 = vcmp.gt.f32.partialorder %v909_v58, 0.0  ;;  %v924_v47 = vadd.f32 %v3004_v30, %v2916_v33  ;;  %v956_v48 = vsel %vm940_vm15, %v914_v2, %v948_v32 }
 0x1d8   : > { %3011 = vmatmul.mubr.msk.f32.vlgmr.msra.gmra.mxu1 %vm963_vm11, %v962_v60  ;;  %3013 = vmatprep.subr.mxu1 %v954_v26  ;;  %v918_v44 = vpop.f32.mrf.mxu0 }
 0x1d9   : > { %3014 = vmatpush3.msra.mxu1 %v954_v26  ;;  %3015 = vmatprep.mubr.msk.f32.mxu1 %vm963_vm11, %v3636_v52  ;;  %v955_v38 = vsel %vm939_vm14, %v909_v58, %v947_v10  ;;  %v919_v43 = vadd.f32 %v2916_v33, %v918_v44  ;;  %v950_v28 = vmul.f32 0.01, %v924_v47  ;;  %vm942_vm2 = vcmp.gt.f32.partialorder %v924_v47, 0.0 }
 0x1da   : > { %3018 = vmatprep.subr.mxu1 %v955_v38  ;;  %v3007_v62 = vpop.f32.mrf.mxu0 }
 0x1db   : > { %v949_v25 = vmul.f32 0.01, %v919_v43  ;;  %vm941_vm0 = vcmp.gt.f32.partialorder %v919_v43, 0.0  ;;  %v934_v1 = vadd.f32 %v3007_v62, %v2916_v33  ;;  %v958_v8 = vsel %vm942_vm2, %v924_v47, %v950_v28 }
 0x1dc   : > { %3016 = vmatmul.mubr.msk.f32.vlgmr.msra.gmra.mxu1 %vm963_vm11, %v962_v60  ;;  %v928_v11 = vpop.f32.mrf.mxu0 }
 0x1dd   : > { %3019 = vmatpush3.msra.mxu1 %v955_v38  ;;  %3020 = vmatprep.mubr.msk.f32.mxu1 %vm963_vm11, %v3636_v52  ;;  %v929_v40 = vadd.f32 %v2916_v33, %v928_v11  ;;  %v957_v35 = vsel %vm941_vm0, %v919_v43, %v949_v25  ;;  %v952_v21 = vmul.f32 0.01, %v934_v1  ;;  %vm944_vm3 = vcmp.gt.f32.partialorder %v934_v1, 0.0 }
 0x1de   : > { %3023 = vmatprep.subr.mxu1 %v956_v48 }
 0x1df   : > { %v951_v53 = vmul.f32 0.01, %v929_v40  ;;  %vm943_vm1 = vcmp.gt.f32.partialorder %v929_v40, 0.0  ;;  %v960_v12 = vsel %vm944_vm3, %v934_v1, %v952_v21 }
 0x1e0   : > { %3021 = vmatmul.mubr.msk.f32.vlgmr.msra.gmra.mxu1 %vm963_vm11, %v962_v60 }
 0x1e1   : > { %3024 = vmatpush3.msra.mxu1 %v956_v48  ;;  %3025 = vmatprep.mubr.msk.f32.mxu1 %vm963_vm11, %v3636_v52  ;;  %v959_v54 = vsel %vm943_vm1, %v929_v40, %v951_v53 }
 0x1e2   : > { %3028 = vmatprep.subr.mxu1 %v957_v35  ;;  %3038 = vmatprep.subr.mxu0 %v959_v54 }
 0x1e3   : > { %3039 = vmatpush3.msra.mxu0 %v959_v54 }
 0x1e4   : > { %3026 = vmatmul.mubr.msk.f32.vlgmr.msra.gmra.mxu1 %vm963_vm11, %v962_v60  ;;  %3041 = vmatmul.mubr.msk.f32.vlgmr.msra.gmra.mxu0 %vm963_vm11, %v962_v60 }
 0x1e5   : > { %3029 = vmatpush3.msra.mxu1 %v957_v35  ;;  %3030 = vmatprep.mubr.msk.f32.mxu1 %vm963_vm11, %v3636_v52 }
 0x1e6   : > { %3033 = vmatprep.subr.mxu1 %v958_v8 }
 0x1e8   : > { %3031 = vmatmul.mubr.msk.f32.vlgmr.msra.gmra.mxu1 %vm963_vm11, %v962_v60 }
 0x1e9   : > { %3034 = vmatpush3.msra.mxu1 %v958_v8  ;;  %3035 = vmatprep.mubr.msk.f32.mxu1 %vm963_vm11, %v3636_v52 }
 0x1ea   : > { %3043 = vmatprep.subr.mxu1 %v960_v12 }
 0x1ec   : > { %3036 = vmatmul.mubr.msk.f32.vlgmr.msra.gmra.mxu1 %vm963_vm11, %v962_v60 }
 0x1ed   : > { %3044 = vmatpush3.msra.mxu1 %v960_v12  ;;  %3045 = vmatprep.mubr.msk.f32.mxu1 %vm963_vm11, %v3636_v52 }
 0x1f0   : > { %3046 = vmatmul.mubr.msk.f32.vlgmr.msra.gmra.mxu1 %vm963_vm11, %v962_v60 }
 0x298   : > { %v3012_v9 = vpop.f32.mrf.mxu1 }
 0x299   : > { %1046 = vst [vmem:[#allocation2] sm:$0xff] %v3012_v9 }
 0x29a   : > { %v1036_v31 = vpop.f32.mrf.mxu1 }
 0x29b   : > { %1045 = vst [vmem:[#allocation2 + $0x30] sm:$0xff] %v1036_v31 }
 0x29c   : > { %v3017_v15 = vpop.f32.mrf.mxu1 }
 0x29d   : > { %1124 = vst [vmem:[#allocation2 + $0x18] sm:$0xff] %v3017_v15 }
 0x29e   : > { %v1113_v3 = vpop.f32.mrf.mxu1 }
 0x29f   : > { %1123 = vst [vmem:[#allocation2 + $0x58] sm:$0xff] %v1113_v3 }
 0x2a0   : > { %v3022_v34 = vpop.f32.mrf.mxu1 }
 0x2a1   : > { %1202 = vst [vmem:[#allocation2 + $0x68] sm:$0xff] %v3022_v34 }
 0x2a2   : > { %v1191_v16 = vpop.f32.mrf.mxu1 }
 0x2a3   : > { %1201 = vst [vmem:[#allocation2 + $0x50] sm:$0xff] %v1191_v16 }
 0x2a4   : > { %v3027_v59 = vpop.f32.mrf.mxu1  ;;  %v3042_v46 = vpop.f32.mrf.mxu0 }
 0x2a5   : > { %1280 = vst [vmem:[#allocation2 + $0x48] sm:$0xff] %v3027_v59  ;;  %1514 = vst [vmem:[#allocation2 + $0x70] sm:$0xff] %v3042_v46 }
 0x2a6   : > { %v1269_v13 = vpop.f32.mrf.mxu1  ;;  %v1503_v45 = vpop.f32.mrf.mxu0 }
 0x2a7   : > { %1279 = vst [vmem:[#allocation2 + $0x8] sm:$0xff] %v1269_v13  ;;  %1513 = vst [vmem:[#allocation2 + $0x60] sm:$0xff] %v1503_v45 }
 0x2a8   : > { %v3032_v19 = vpop.f32.mrf.mxu1 }
 0x2a9   : > { %1358 = vst [vmem:[#allocation2 + $0x20] sm:$0xff] %v3032_v19 }
 0x2aa   : > { %v1347_v41 = vpop.f32.mrf.mxu1 }
 0x2ab   : > { %1357 = vst [vmem:[#allocation2 + $0x40] sm:$0xff] %v1347_v41 }
 0x2ac   : > { %v3037_v42 = vpop.f32.mrf.mxu1 }
 0x2ad   : > { %1436 = vst [vmem:[#allocation2 + $0x38] sm:$0xff] %v3037_v42 }
 0x2ae   : > { %v1425_v7 = vpop.f32.mrf.mxu1 }
 0x2af   : > { %1435 = vst [vmem:[#allocation2 + $0x10] sm:$0xff] %v1425_v7 }
 0x2b0   : > { %v3047_v20 = vpop.f32.mrf.mxu1 }
 0x2b1   : > { %1592 = vst [vmem:[#allocation2 + $0x28] sm:$0xff] %v3047_v20 }
 0x2b2   : > { %v1581_v57 = vpop.f32.mrf.mxu1 }
 0x2b3   : > { %1591 = vst [vmem:[#allocation2 + $0x78] sm:$0xff] %v1581_v57 }
 0x2b4 PF: > { %v1594_v4 = vld [vmem:[#allocation2 + $0x30] sm:$0xff]  ;;  %v1615_v27 = vlaneseq  ;;  %v1602_v22 = vld [vmem:[#allocation2 + $0x40] sm:$0xff]  ;;  %v3160_v37 = vmov 1983009808   ;;  %v3161_v63 = vmov 0.0   ;;  %vm1938_vm4 = vcmask 64512  }
 0x2b5   : > { %v1598_v17 = vld [vmem:[#allocation2 + $0x50] sm:$0xff]  ;;  %v1613_v61 = vunpack.c.l.s4 %v3160_v37  ;;  %2006 = vmatprep.mubr.f32.mxu0 %v3161_v63  ;;  %2077 = vmatprep.mubr.f32.mxu1 %v3161_v63  ;;  %v1606_v49 = vld [vmem:[#allocation2 + $0x60] sm:$0xff]  ;;  %v3162_v56 = vmov 1934713408   ;;  %v3100_v52 = vld [vmem:[#allocation2 + $0x58] ss:$-80 sps:$4 sm:$0xff]  }
 0x2b6   : > { %v1616_v50 = vshrl.u32 %v1615_v27, 7  ;;  %v1677_v0 = vunpack.c.l.s4 %v3162_v56  ;;  %v1610_v18 = vcombine.low %v1594_v4, %v1598_v17  ;;  %v3102_v33 = vld [vmem:[#allocation2 + $0x5c] ss:$-80 sps:$4 sm:$0xff]   ;;  %v1642_v55 = vcombine.low %v1602_v22, %v1606_v49  ;;  %v3106_v28 = vld [vmem:[#allocation2] ss:$104 sps:$4 sm:$0xff]  }
 0x2b7   : > { %v1614_v6 = vunpack.c.0.s8 %v1613_v61  ;;  %v1611_v23 = vcombine.high %v1594_v4, %v1598_v17  ;;  %v1643_v14 = vcombine.high %v1602_v22, %v1606_v49  ;;  %v3108_v54 = vld [vmem:[#allocation2 + $0x18] ss:$48 sps:$4 sm:$0xff]   ;;  %v3110_v21 = vld [vmem:[#allocation2 + $0x20] ss:$80 sps:$4 sm:$0xff]   ;;  %v3114_v3 = vld [vmem:[#allocation2 + $0x4] ss:$104 sps:$4 sm:$0xff]  }
 0x2b8   : > { %v1678_v5 = vunpack.c.0.s8 %v1677_v0  ;;  %v3112_v15 = vld [vmem:[#allocation2 + $0x38] ss:$-16 sps:$4 sm:$0xff]   ;;  %v3115_v34 = vld [vmem:[#allocation2 + $0x1c] ss:$48 sps:$4 sm:$0xff]   ;;  %v3116_v45 = vld [vmem:[#allocation2 + $0x24] ss:$80 sps:$4 sm:$0xff]  }
 0x2b9   : > { %v3670_v51 = vsub.s32 %v1614_v6, %v1616_v50  ;;  %v3691_v19 = vld [vmem:[%s3251_s21] sm:$0xff]  ;;  %v3117_v57 = vld [vmem:[#allocation2 + $0x3c] ss:$-16 sps:$4 sm:$0xff]  }
 0x2ba   : > { %v3103_v29 = vld [vmem:[#allocation2 + $0x10] ss:$104 sps:$4 sm:$0xff]   ;;  %v3105_v39 = vld [vmem:[#allocation2 + $0x14] ss:$104 sps:$4 sm:$0xff]   ;;  %v3672_v24 = vsub.s32 %v1678_v5, %v1616_v50 }
 0x2bb   : > { %v1618_v2 = vrot.slane %v1610_v18, %v3670_v51  ;;  %v1634_v36 = vrot.slane %v3100_v52, %v3670_v51  ;;  %v1650_v58 = vrot.slane %v1642_v55, %v3670_v51  ;;  %v1666_v60 = vrot.slane %v3103_v29, %v3670_v51 }
 0x2bc   : > { %v1625_v30 = vrot.slane %v1611_v23, %v3670_v51  ;;  %v1641_v10 = vrot.slane %v3102_v33, %v3670_v51  ;;  %v1657_v26 = vrot.slane %v1643_v14, %v3670_v51  ;;  %v1673_v44 = vrot.slane %v3105_v39, %v3670_v51 }
 0x2bd   : > { %v1674_v32 = vcombine.low %v1618_v2, %v1634_v36  ;;  %v1706_v38 = vcombine.low %v1650_v58, %v1666_v60  ;;  %v1675_v43 = vcombine.high %v1618_v2, %v1634_v36  ;;  %v1707_v62 = vcombine.high %v1650_v58, %v1666_v60 }
 0x2be   : > { %v1690_v25 = vcombine.low %v1625_v30, %v1641_v10  ;;  %v1722_v11 = vcombine.low %v1657_v26, %v1673_v44  ;;  %v1691_v47 = vcombine.high %v1625_v30, %v1641_v10  ;;  %v1723_v48 = vcombine.high %v1657_v26, %v1673_v44 }
 0x2bf   : > { %v1682_v40 = vrot.slane %v1674_v32, %v3672_v24  ;;  %v1714_v1 = vrot.slane %v1706_v38, %v3672_v24  ;;  %v1689_v53 = vrot.slane %v1675_v43, %v3672_v24  ;;  %v1721_v35 = vrot.slane %v1707_v62, %v3672_v24 }
 0x2c0   : > { %v1698_v8 = vrot.slane %v1690_v25, %v3672_v24  ;;  %v1730_v12 = vrot.slane %v1722_v11, %v3672_v24  ;;  %v1705_v9 = vrot.slane %v1691_v47, %v3672_v24  ;;  %v1737_v31 = vrot.slane %v1723_v48, %v3672_v24 }
 0x2c1   : > { %v1739_v16 = vcombine.high %v1682_v40, %v1714_v1  ;;  %v1741_v59 = vcombine.high %v1689_v53, %v1721_v35  ;;  %v1738_v46 = vcombine.low %v1682_v40, %v1714_v1  ;;  %v1740_v13 = vcombine.low %v1689_v53, %v1721_v35 }
 0x2c2   : > { %v1743_v41 = vcombine.high %v1698_v8, %v1730_v12  ;;  %v1745_v42 = vcombine.high %v1705_v9, %v1737_v31  ;;  %v1742_v7 = vcombine.low %v1698_v8, %v1730_v12  ;;  %v1744_v20 = vcombine.low %v1705_v9, %v1737_v31 }
 0x2c3   : > { %1972 = vmatprep.subr.mxu0 %v1739_v16  ;;  %2043 = vmatprep.subr.mxu1 %v1741_v59  ;;  %v1754_v4 = vrot.slane %v3106_v28, %v3670_v51  ;;  %v1770_v17 = vrot.slane %v3108_v54, %v3670_v51  ;;  %v1786_v27 = vrot.slane %v3110_v21, %v3670_v51 }
 0x2c4   : > { %1973 = vmatpush1.msra.mxu0 %v1738_v46  ;;  %2044 = vmatpush1.msra.mxu1 %v1740_v13  ;;  %v1802_v22 = vrot.slane %v3112_v15, %v3670_v51  ;;  %v1761_v37 = vrot.slane %v3114_v3, %v3670_v51  ;;  %v1777_v61 = vrot.slane %v3115_v34, %v3670_v51 }
 0x2c5   : > { %2941 = vmatmul.mubr.msk.f32.vlgmr.msra.gmra.mxu0 %vm1938_vm4, %v3691_v19  ;;  %2942 = vmatmul.mubr.msk.f32.vlgmr.msra.gmra.mxu1 %vm1938_vm4, %v3691_v19  ;;  %v1810_v49 = vcombine.low %v1754_v4, %v1770_v17  ;;  %v1811_v50 = vcombine.high %v1754_v4, %v1770_v17  ;;  %v1793_v56 = vrot.slane %v3116_v45, %v3670_v51 }
 0x2c6   : > { %2114 = vmatprep.subr.mxu0 %v1743_v41  ;;  %2185 = vmatprep.subr.mxu1 %v1745_v42  ;;  %v1842_v0 = vcombine.low %v1786_v27, %v1802_v22  ;;  %v1843_v18 = vcombine.high %v1786_v27, %v1802_v22  ;;  %v1809_v6 = vrot.slane %v3117_v57, %v3670_v51 }
 0x2c7   : > { %2115 = vmatpush1.msra.mxu0 %v1742_v7  ;;  %2186 = vmatpush1.msra.mxu1 %v1744_v20  ;;  %v1818_v52 = vrot.slane %v1810_v49, %v3672_v24  ;;  %v1825_v33 = vrot.slane %v1811_v50, %v3672_v24  ;;  %v1826_v55 = vcombine.low %v1761_v37, %v1777_v61 }
 0x2c8   : > { %2148 = vmatprep.mubr.f32.mxu0 %v3161_v63  ;;  %2219 = vmatprep.mubr.f32.mxu1 %v3161_v63  ;;  %v1850_v29 = vrot.slane %v1842_v0, %v3672_v24  ;;  %v1857_v23 = vrot.slane %v1843_v18, %v3672_v24  ;;  %v1858_v14 = vcombine.low %v1793_v56, %v1809_v6 }
 0x2c9   : > { %2943 = vmatmul.mubr.msk.f32.vlgmr.msra.gmra.mxu0 %vm1938_vm4, %v3691_v19  ;;  %2944 = vmatmul.mubr.msk.f32.vlgmr.msra.gmra.mxu1 %vm1938_vm4, %v3691_v19  ;;  %v1834_v39 = vrot.slane %v1826_v55, %v3672_v24  ;;  %v1827_v5 = vcombine.high %v1761_v37, %v1777_v61  ;;  %v1859_v2 = vcombine.high %v1793_v56, %v1809_v6 }
 0x2ca   : > { %v1875_v36 = vcombine.high %v1818_v52, %v1850_v29  ;;  %v1877_v58 = vcombine.high %v1825_v33, %v1857_v23  ;;  %v1874_v60 = vcombine.low %v1818_v52, %v1850_v29  ;;  %v1876_v30 = vcombine.low %v1825_v33, %v1857_v23  ;;  %2290 = vmatprep.mubr.f32.mxu0 %v3161_v63 }
 0x2cb   : > { %2361 = vmatprep.mubr.f32.mxu1 %v3161_v63  ;;  %v1866_v10 = vrot.slane %v1858_v14, %v3672_v24  ;;  %v1841_v26 = vrot.slane %v1827_v5, %v3672_v24  ;;  %v1873_v44 = vrot.slane %v1859_v2, %v3672_v24  ;;  %v1882_v25 = vcombine.low %v3161_v63, %v3161_v63 }
 0x2cc   : > { %2256 = vmatprep.subr.mxu0 %v1875_v36  ;;  %2327 = vmatprep.subr.mxu1 %v1877_v58  ;;  %v1883_v47 = vcombine.high %v3161_v63, %v3161_v63 }
 0x2cd   : > { %2257 = vmatpush1.msra.mxu0 %v1874_v60  ;;  %2328 = vmatpush1.msra.mxu1 %v1876_v30  ;;  %v1879_v32 = vcombine.high %v1834_v39, %v1866_v10  ;;  %v1881_v38 = vcombine.high %v1841_v26, %v1873_v44  ;;  %v1878_v43 = vcombine.low %v1834_v39, %v1866_v10 }
 0x2ce   : > { %2945 = vmatmul.mubr.msk.f32.vlgmr.msra.gmra.mxu0 %vm1938_vm4, %v3691_v19  ;;  %2946 = vmatmul.mubr.msk.f32.vlgmr.msra.gmra.mxu1 %vm1938_vm4, %v3691_v19  ;;  %v1880_v62 = vcombine.low %v1841_v26, %v1873_v44  ;;  %v1890_v11 = vrot.slane %v1882_v25, %v3670_v51  ;;  %v1897_v1 = vrot.slane %v1883_v47, %v3670_v51 }
 0x2cf   : > { %2398 = vmatprep.subr.mxu0 %v1879_v32  ;;  %2469 = vmatprep.subr.mxu1 %v1881_v38 }
 0x2d0   : > { %2399 = vmatpush1.msra.mxu0 %v1878_v43  ;;  %2470 = vmatpush1.msra.mxu1 %v1880_v62  ;;  %v1898_v48 = vcombine.low %v1890_v11, %v1890_v11  ;;  %v1899_v40 = vcombine.high %v1890_v11, %v1890_v11  ;;  %v1914_v28 = vcombine.low %v1897_v1, %v1897_v1 }
 0x2d1   : > { %2432 = vmatprep.mubr.f32.mxu0 %v3161_v63  ;;  %2503 = vmatprep.mubr.f32.mxu1 %v3161_v63  ;;  %v1915_v54 = vcombine.high %v1897_v1, %v1897_v1 }
 0x2d2   : > { %2947 = vmatmul.mubr.msk.f32.vlgmr.msra.gmra.mxu0 %vm1938_vm4, %v3691_v19  ;;  %2948 = vmatmul.mubr.msk.f32.vlgmr.msra.gmra.mxu1 %vm1938_vm4, %v3691_v19  ;;  %v1906_v53 = vrot.slane %v1898_v48, %v3672_v24  ;;  %v1913_v35 = vrot.slane %v1899_v40, %v3672_v24  ;;  %v1922_v12 = vrot.slane %v1914_v28, %v3672_v24 }
 0x2d3   : > { %v1929_v9 = vrot.slane %v1915_v54, %v3672_v24 }
 0x2d4   : > { %v1930_v21 = vcombine.low %v1906_v53, %v1906_v53  ;;  %v1932_v8 = vcombine.low %v1913_v35, %v1913_v35  ;;  %v1931_v31 = vcombine.high %v1906_v53, %v1906_v53  ;;  %v1933_v15 = vcombine.high %v1913_v35, %v1913_v35 }
 0x2d5   : > { %v3741_v13 = vcombine.low %v1922_v12, %v1922_v12  ;;  %v3743_v45 = vcombine.low %v1929_v9, %v1929_v9  ;;  %v3745_v42 = vcombine.high %v1922_v12, %v1922_v12  ;;  %v3747_v7 = vcombine.high %v1929_v9, %v1929_v9 }
 0x385   : > { %v2008_v3 = vpop.f32.mrf.mxu0  ;;  %v2079_v63 = vpop.f32.mrf.mxu1 }
 0x386   : > { %v2009_v34 = vadd.f32 %v2008_v3, %v1930_v21  ;;  %v2080_v16 = vadd.f32 %v2079_v63, %v1932_v8 }
 0x387   : > { %v2010_v59 = vpop.f32.mrf.mxu0  ;;  %v2081_v46 = vpop.f32.mrf.mxu1 }
 0x388   : > { %v2011_v19 = vadd.f32 %v2010_v59, %v1931_v31  ;;  %v2082_v41 = vadd.f32 %v2081_v46, %v1933_v15  ;;  %v2510_v4 = vcombine.low %v2009_v34, %v2080_v16  ;;  %v2511_v17 = vcombine.high %v2009_v34, %v2080_v16 }
 0x389   : > { %v2150_v20 = vpop.f32.mrf.mxu0  ;;  %v2221_v57 = vpop.f32.mrf.mxu1 }
 0x38a   : > { %v2526_v27 = vcombine.low %v2011_v19, %v2082_v41  ;;  %v2527_v22 = vcombine.high %v2011_v19, %v2082_v41  ;;  %v2151_v37 = vadd.f32 %v2150_v20, %v3741_v13  ;;  %v2222_v61 = vadd.f32 %v2221_v57, %v3743_v45 }
 0x38b   : > { %v2152_v49 = vpop.f32.mrf.mxu0  ;;  %v2223_v50 = vpop.f32.mrf.mxu1  ;;  %v2518_v55 = vrot.slane %v2510_v4, %v3670_v51  ;;  %v2525_v29 = vrot.slane %v2511_v17, %v3670_v51 }
 0x38c   : > { %v2534_v56 = vrot.slane %v2526_v27, %v3670_v51  ;;  %v2541_v0 = vrot.slane %v2527_v22, %v3670_v51  ;;  %v2153_v18 = vadd.f32 %v2152_v49, %v3745_v42  ;;  %v2224_v6 = vadd.f32 %v2223_v50, %v3747_v7 }
 0x38d   : > { %v2542_v52 = vcombine.low %v2151_v37, %v2222_v61  ;;  %v2543_v33 = vcombine.high %v2151_v37, %v2222_v61 }
 0x38e   : > { %v2292_v23 = vpop.f32.mrf.mxu0  ;;  %v2363_v14 = vpop.f32.mrf.mxu1  ;;  %v2558_v39 = vcombine.low %v2153_v18, %v2224_v6  ;;  %v2559_v5 = vcombine.high %v2153_v18, %v2224_v6  ;;  %v2574_v2 = vcombine.low %v2518_v55, %v2534_v56  ;;  %v2575_v36 = vcombine.high %v2518_v55, %v2534_v56 }
 0x38f   : > { %v2590_v58 = vcombine.low %v2525_v29, %v2541_v0  ;;  %v2591_v60 = vcombine.high %v2525_v29, %v2541_v0  ;;  %v2550_v26 = vrot.slane %v2542_v52, %v3670_v51  ;;  %v2557_v44 = vrot.slane %v2543_v33, %v3670_v51 }
 0x390   : > { %v2294_v30 = vpop.f32.mrf.mxu0  ;;  %v2365_v10 = vpop.f32.mrf.mxu1  ;;  %v2566_v32 = vrot.slane %v2558_v39, %v3670_v51  ;;  %v2573_v38 = vrot.slane %v2559_v5, %v3670_v51  ;;  %v2293_v43 = vadd.f32 %v2292_v23, %v1930_v21  ;;  %v2364_v62 = vadd.f32 %v2363_v14, %v1932_v8 }
 0x391   : > { %v2295_v25 = vadd.f32 %v2294_v30, %v1931_v31  ;;  %v2366_v11 = vadd.f32 %v2365_v10, %v1933_v15  ;;  %v2582_v28 = vrot.slane %v2574_v2, %v3672_v24  ;;  %v2589_v54 = vrot.slane %v2575_v36, %v3672_v24 }
 0x392   : > { %v2606_v47 = vcombine.low %v2550_v26, %v2566_v32  ;;  %v2607_v48 = vcombine.high %v2550_v26, %v2566_v32  ;;  %v2622_v40 = vcombine.low %v2557_v44, %v2573_v38  ;;  %v2623_v1 = vcombine.high %v2557_v44, %v2573_v38  ;;  %v2434_v53 = vpop.f32.mrf.mxu0  ;;  %v2505_v35 = vpop.f32.mrf.mxu1 }
 0x393   : > { %v2662_v12 = vcombine.low %v2295_v25, %v2366_v11  ;;  %v2598_v31 = vrot.slane %v2590_v58, %v3672_v24  ;;  %v2605_v15 = vrot.slane %v2591_v60, %v3672_v24  ;;  %v2646_v63 = vcombine.low %v2293_v43, %v2364_v62 }
 0x394   : > { %v2614_v9 = vrot.slane %v2606_v47, %v3672_v24  ;;  %v2621_v3 = vrot.slane %v2607_v48, %v3672_v24  ;;  %v2630_v21 = vrot.slane %v2622_v40, %v3672_v24  ;;  %v2637_v8 = vrot.slane %v2623_v1, %v3672_v24  ;;  %v2436_v41 = vpop.f32.mrf.mxu0  ;;  %v2507_v20 = vpop.f32.mrf.mxu1 }
 0x395   : > { %v2663_v34 = vcombine.high %v2295_v25, %v2366_v11  ;;  %v2647_v22 = vcombine.high %v2293_v43, %v2364_v62  ;;  %v2670_v37 = vrot.slane %v2662_v12, %v3670_v51  ;;  %v2435_v61 = vadd.f32 %v2434_v53, %v3741_v13 }
 0x396   : > { %v2638_v16 = vcombine.low %v2582_v28, %v2614_v9  ;;  %v2639_v59 = vcombine.high %v2582_v28, %v2614_v9  ;;  %v2640_v46 = vcombine.low %v2589_v54, %v2621_v3  ;;  %v2641_v19 = vcombine.high %v2589_v54, %v2621_v3 }
 0x397   : > { %v2642_v57 = vcombine.low %v2598_v31, %v2630_v21  ;;  %v2643_v4 = vcombine.high %v2598_v31, %v2630_v21  ;;  %v2644_v17 = vcombine.low %v2605_v15, %v2637_v8  ;;  %v2645_v27 = vcombine.high %v2605_v15, %v2637_v8 }
 0x398   : > { %2782 = vst [vmem:[%s3256_s26] sm:$0xff] %v2638_v16  ;;  %2784 = vst [vmem:[%s3256_s26 + $0x10] sm:$0xff] %v2639_v59  ;;  %v2506_v49 = vadd.f32 %v2505_v35, %v3743_v45  ;;  %v2437_v50 = vadd.f32 %v2436_v41, %v3745_v42  ;;  %v2508_v56 = vadd.f32 %v2507_v20, %v3747_v7 }
 0x399   : > { %2786 = vst [vmem:[%s3256_s26 + $0x20] sm:$0xff] %v2640_v46  ;;  %2788 = vst [vmem:[%s3256_s26 + $0x30] sm:$0xff] %v2641_v19  ;;  %v2654_v0 = vrot.slane %v2646_v63, %v3670_v51  ;;  %v2677_v18 = vrot.slane %v2663_v34, %v3670_v51  ;;  %v2661_v29 = vrot.slane %v2647_v22, %v3670_v51 }
 0x39a   : > { %2790 = vst [vmem:[%s3256_s26 + $0x40] sm:$0xff] %v2642_v57  ;;  %2792 = vst [vmem:[%s3256_s26 + $0x50] sm:$0xff] %v2643_v4  ;;  %v2678_v6 = vcombine.low %v2435_v61, %v2506_v49  ;;  %v2679_v52 = vcombine.high %v2435_v61, %v2506_v49  ;;  %v2694_v33 = vcombine.low %v2437_v50, %v2508_v56 }
 0x39b   : > { %2794 = vst [vmem:[%s3256_s26 + $0x60] sm:$0xff] %v2644_v17  ;;  %2796 = vst [vmem:[%s3256_s26 + $0x70] sm:$0xff] %v2645_v27  ;;  %v2695_v55 = vcombine.high %v2437_v50, %v2508_v56  ;;  %v2710_v23 = vcombine.low %v2654_v0, %v2670_v37  ;;  %v2711_v14 = vcombine.high %v2654_v0, %v2670_v37 }
 0x39c   : > { %v2686_v13 = vrot.slane %v2678_v6, %v3670_v51  ;;  %v2693_v45 = vrot.slane %v2679_v52, %v3670_v51  ;;  %v2702_v42 = vrot.slane %v2694_v33, %v3670_v51  ;;  %v2726_v39 = vcombine.low %v2661_v29, %v2677_v18 }
 0x39d   : > { %v2709_v7 = vrot.slane %v2695_v55, %v3670_v51  ;;  %v2727_v5 = vcombine.high %v2661_v29, %v2677_v18  ;;  %v2718_v30 = vrot.slane %v2710_v23, %v3672_v24  ;;  %v2725_v10 = vrot.slane %v2711_v14, %v3672_v24 }
 0x39e   : > { %v2742_v2 = vcombine.low %v2686_v13, %v2702_v42  ;;  %v2743_v36 = vcombine.high %v2686_v13, %v2702_v42  ;;  %v2734_v38 = vrot.slane %v2726_v39, %v3672_v24 }
 0x39f   : > { %v2758_v58 = vcombine.low %v2693_v45, %v2709_v7  ;;  %v2759_v60 = vcombine.high %v2693_v45, %v2709_v7  ;;  %v2741_v43 = vrot.slane %v2727_v5, %v3672_v24 }
 0x3a0   : > { %v2750_v26 = vrot.slane %v2742_v2, %v3672_v24  ;;  %v2757_v44 = vrot.slane %v2743_v36, %v3672_v24 }
 0x3a1   : > { %v2766_v51 = vrot.slane %v2758_v58, %v3672_v24  ;;  %v2773_v32 = vrot.slane %v2759_v60, %v3672_v24 }
 0x3a2   : > { %v2774_v62 = vcombine.low %v2718_v30, %v2750_v26  ;;  %v2775_v25 = vcombine.high %v2718_v30, %v2750_v26  ;;  %v2776_v11 = vcombine.low %v2725_v10, %v2757_v44  ;;  %v2777_v47 = vcombine.high %v2725_v10, %v2757_v44 }
 0x3a3   : > { %v2778_v48 = vcombine.low %v2734_v38, %v2766_v51  ;;  %v2779_v40 = vcombine.high %v2734_v38, %v2766_v51  ;;  %v2780_v1 = vcombine.low %v2741_v43, %v2773_v32  ;;  %v2781_v53 = vcombine.high %v2741_v43, %v2773_v32 }
 0x3a4   : > { %2783 = vst [vmem:[%s3256_s26 + $0x8] sm:$0xff] %v2774_v62  ;;  %2785 = vst [vmem:[%s3256_s26 + $0x18] sm:$0xff] %v2775_v25 }
 0x3a5   : > { %2787 = vst [vmem:[%s3256_s26 + $0x28] sm:$0xff] %v2776_v11  ;;  %2789 = vst [vmem:[%s3256_s26 + $0x38] sm:$0xff] %v2777_v47 }
 0x3a6   : > { %2791 = vst [vmem:[%s3256_s26 + $0x48] sm:$0xff] %v2778_v48  ;;  %2793 = vst [vmem:[%s3256_s26 + $0x58] sm:$0xff] %v2779_v40 }
 0x3a7   : > { %2795 = vst [vmem:[%s3256_s26 + $0x68] sm:$0xff] %v2780_v1  ;;  %2797 = vst [vmem:[%s3256_s26 + $0x78] sm:$0xff] %v2781_v53 }
 0x3a8 PF: > { %s18_s9 = sadd.s32 1, %s3156_s9   ;;  %s3847_s27 = smov %s3148_s29 }
 0x3a9   : > { %p15_p9 = scmp.ge.s32.totalorder %s18_s9, 6   ;;  %s3848_s28 = smov %s3152_s30 }
 0x3aa   : > { %s3849_s29 = smov %s3852_s10  ;;  %s3850_s30 = smov %s3856_s11 }
 0x3ab   :  { %17 = sbr.rel (!%p15_p9) target bundleno = 3 (0x3), region = 96 }

</bundles_post_ra>
